<compile_context>
chip_gen: v6e
topology: v6e:2x2x1
jax: 0.10.0
libtpu: 0.0.40
codegen_flags: <defaults>
</compile_context>

<pallas_src>
import jax
import jax.numpy as jnp
from jax.experimental import pallas as pl
from jax.experimental.pallas import tpu as pltpu

EPS = 1e-5


def _mlp_chunk_kernel(x_ref, w_ref, gb_ref, o_ref):
    """One grid step == `layers_per_step` layers.

    x_ref  : (B, N)        input activations (only consumed on the first chunk)
    w_ref  : (Lc, N, N)    per-chunk weights, already (in_features, out_features)
    gb_ref : (Lc, 2, N)    per-chunk BN affine params; [:,0]=gamma, [:,1]=beta
    o_ref  : (B, N)        output block; constant index map -> stays resident in
                           VMEM across chunks and doubles as the activation carry.
    """
    c = pl.program_id(0)

    # Seed the carry with the kernel input on the first chunk.
    @pl.when(c == 0)
    def _():
        o_ref[...] = x_ref[...].astype(jnp.float32)

    n_layers = w_ref.shape[0]          # static chunk size
    inv_b = 1.0 / o_ref.shape[0]       # static 1/B constant

    def layer(i, h):
        w = w_ref[i]                                   # (N, N), (in, out) layout
        # Linear (no bias): h @ W on the MXU, f32 accumulation (bf16 inputs when
        # weight streaming is enabled).
        y = jnp.dot(h.astype(w.dtype), w, preferred_element_type=jnp.float32)

        # BatchNorm1d, training mode, biased variance, eps=1e-5, affine.
        # One-pass stats: the two sublane reductions issue back-to-back.
        s1 = jnp.sum(y, axis=0, keepdims=True)         # (1, N)
        s2 = jnp.sum(y * y, axis=0, keepdims=True)     # (1, N)
        mean = s1 * inv_b
        var = jnp.maximum(s2 * inv_b - mean * mean, 0.0)   # clamp: cancellation
        gb = gb_ref[i]                                 # (2, N)
        scale = gb[0:1, :] * jax.lax.rsqrt(var + EPS)  # gamma * inv_std   (1, N)
        shift = gb[1:2, :] - mean * scale              # beta - mean*scale (1, N)
        # Folded normalization + affine: one (B,N) mul + one (B,N) add.
        y = y * scale + shift

        # ReLU
        return jnp.maximum(y, 0.0)

    # TODO(synk): the PyTorch forward prints per-layer std and early-exits on
    # NaN; that is host-side logging / data-dependent control flow, not tensor
    # semantics, so it is omitted here.  BN running_mean/running_var updates are
    # module state, not part of the forward output, and are also omitted.
    h = jax.lax.fori_loop(0, n_layers, layer, o_ref[...], unroll=True)
    o_ref[...] = h


def _pick_layers_per_step(num_layers, requested, feat, weight_itemsize):
    """Clamp requested chunk size to a divisor of L and to the VMEM budget."""
    # Conservative budget for the double-buffered weight + gb chunks so the
    # kernel fits every generation (v7x has only 64 MiB physical VMEM per TC).
    weight_vmem_budget = 40 * 1024 * 1024
    per_layer_bytes = 2 * (feat * feat * weight_itemsize + 2 * feat * 4)
    max_lc = max(1, weight_vmem_budget // per_layer_bytes)
    lc = max(1, min(requested, num_layers, max_lc))
    while num_layers % lc != 0:   # make it a divisor of L (L <= ~100s: cheap)
        lc -= 1
    return lc


def mlp_forward(x, weights, gammas, betas, *, layers_per_step=25,
                weight_dtype=jnp.bfloat16):
    """x: (B, N) f32; weights: (L, N, N) in PyTorch (out, in) layout;
    gammas/betas: (L, N).

    weight_dtype=jnp.bfloat16 (default) streams weights at half the HBM traffic
    and native MXU rate; pass jnp.float32 for exact parity with PyTorch.
    """
    B, N = x.shape
    L = weights.shape[0]
    itemsize = jnp.dtype(weight_dtype).itemsize
    lc = _pick_layers_per_step(L, layers_per_step, N, itemsize)
    n_chunks = L // lc

    # Pre-transpose once at trace time: (L, out, in) -> (L, in, out) so the
    # kernel never transposes on the XLU.  Optionally downcast for streaming.
    w_t = jnp.transpose(weights, (0, 2, 1)).astype(weight_dtype)
    # Fuse gamma/beta into a single (L, 2, N) array -> one DMA per chunk.
    gb = jnp.stack([gammas.astype(jnp.float32),
                    betas.astype(jnp.float32)], axis=1)      # (L, 2, N)

    # Explicit VMEM budget: double-buffered blocks for every operand + slack.
    w_block = lc * N * N * itemsize
    gb_block = lc * 2 * N * 4
    xo_block = B * N * 4
    needed = 2 * (w_block + gb_block + 2 * xo_block) + (1 << 20)
    vmem_limit = max(needed, 32 * 1024 * 1024)

    return pl.pallas_call(
        _mlp_chunk_kernel,
        out_shape=jax.ShapeDtypeStruct((B, N), jnp.float32),
        grid_spec=pltpu.PrefetchScalarGridSpec(
            num_scalar_prefetch=0,
            grid=(n_chunks,),
            in_specs=[
                pl.BlockSpec((B, N), lambda c: (0, 0)),           # x (used at c==0)
                pl.BlockSpec((lc, N, N), lambda c: (c, 0, 0)),    # weight chunk
                pl.BlockSpec((lc, 2, N), lambda c: (c, 0, 0)),    # BN gamma+beta
            ],
            # Constant block index -> resident block, used as activation carry.
            out_specs=pl.BlockSpec((B, N), lambda c: (0, 0)),
        ),
        compiler_params=pltpu.CompilerParams(
            # Sequential dependency across layer chunks.
            dimension_semantics=("arbitrary",),
            vmem_limit_bytes=vmem_limit,
        ),
    )(x, w_t, gb)


def mlp_reference(x, weights, gammas, betas):
    """Pure-JAX reference of the PyTorch forward (training-mode BN)."""
    h = x
    for l in range(weights.shape[0]):
        y = h @ weights[l].T
        mean = jnp.mean(y, axis=0, keepdims=True)
        var = jnp.mean((y - mean) ** 2, axis=0, keepdims=True)
        y = (y - mean) * jax.lax.rsqrt(var + EPS)
        y = y * gammas[l][None, :] + betas[l][None, :]
        h = jnp.maximum(y, 0.0)
    return h


if __name__ == "__main__":
    BATCH = 16            # batch size
    NEURAL_NUM = 128      # neural_num
    LAYERS = 8            # layers (PyTorch default is 100; kept small for demo)

    key = jax.random.PRNGKey(0)
    kx, kw = jax.random.split(key)

    # Input: standard normal, like the original script's torch.randn.
    x = jax.random.normal(kx, (BATCH, NEURAL_NUM), dtype=jnp.float32)

    # MLP.initialize(): nn.init.normal_(weight, std=1); Linear has no bias.
    weights = jax.random.normal(kw, (LAYERS, NEURAL_NUM, NEURAL_NUM),
                                dtype=jnp.float32)
    # BatchNorm1d default affine params: weight=1, bias=0.
    gammas = jnp.ones((LAYERS, NEURAL_NUM), dtype=jnp.float32)
    betas = jnp.zeros((LAYERS, NEURAL_NUM), dtype=jnp.float32)

    ref = jax.block_until_ready(mlp_reference(x, weights, gammas, betas))

    # f32 weight path: exact parity with the PyTorch module.
    out_f32 = jax.block_until_ready(
        mlp_forward(x, weights, gammas, betas, weight_dtype=jnp.float32))
    assert out_f32.shape == (BATCH, NEURAL_NUM)
    assert jnp.allclose(out_f32, ref, atol=1e-3, rtol=1e-3), "mismatch vs reference"

    # Default bf16 weight-streaming path: same structure, ~2x less weight DMA.
    # (std=1 random deep nets are chaotic, so bf16 drifts from f32 by design;
    # just check it runs and produces finite output.)
    out_bf16 = jax.block_until_ready(mlp_forward(x, weights, gammas, betas))
    assert out_bf16.shape == (BATCH, NEURAL_NUM)
    assert bool(jnp.all(jnp.isfinite(out_bf16))), "non-finite bf16 output"

    print("KERNEL_OK")
</pallas_src>

<mosaic_0001>
module attributes {stable_mosaic.version = 11 : i64} {
  func.func @_mlp_chunk_kernel(%arg0: i32, %arg1: memref<16x128xf32, #tpu.memory_space<vmem>>, %arg2: memref<8x128x128xf32, #tpu.memory_space<vmem>>, %arg3: memref<8x2x128xf32, #tpu.memory_space<vmem>>, %arg4: memref<16x128xf32, #tpu.memory_space<vmem>>) attributes {dimension_semantics = [#tpu.dimension_semantics<arbitrary>], iteration_bounds = array<i64: 1>, scalar_prefetch = 0 : i64, scratch_operands = 0 : i64, tpu.core_type = #tpu.core_type<tc>, window_params = [{pipeline_mode = #tpu.pipeline_mode<synchronous>, transform_indices = @transform_0, window_bounds = array<i64: 16, 128>}, {transform_indices = @transform_1, window_bounds = array<i64: 8, 128, 128>}, {transform_indices = @transform_2, window_bounds = array<i64: 8, 2, 128>}, {pipeline_mode = #tpu.pipeline_mode<synchronous>, transform_indices = @transform_3, window_bounds = array<i64: 16, 128>}]} {
    %c0_i32 = arith.constant 0 : i32
    %0 = arith.cmpi eq, %arg0, %c0_i32 : i32
    %1 = arith.extui %0 : i1 to i32
    %c0_i32_0 = arith.constant 0 : i32
    %2 = arith.cmpi ne, %1, %c0_i32_0 : i32
    scf.if %2 {
      %c0_100 = arith.constant 0 : index
      %c0_101 = arith.constant 0 : index
      %277 = vector.load %arg1[%c0_100, %c0_101] : memref<16x128xf32, #tpu.memory_space<vmem>>, vector<16x128xf32>
      %c0_102 = arith.constant 0 : index
      %c0_103 = arith.constant 0 : index
      %278 = vector.load %arg4[%c0_102, %c0_103] : memref<16x128xf32, #tpu.memory_space<vmem>>, vector<16x128xf32>
      tpu.vector_store %arg4[%c0_102, %c0_103], %277 {strides = array<i32>} : memref<16x128xf32, #tpu.memory_space<vmem>>, vector<16x128xf32>,
    } else {
    }
    %c0 = arith.constant 0 : index
    %c0_1 = arith.constant 0 : index
    %3 = vector.load %arg4[%c0, %c0_1] : memref<16x128xf32, #tpu.memory_space<vmem>>, vector<16x128xf32>
    %c0_i32_2 = arith.constant 0 : i32
    %4 = arith.index_cast %c0_i32_2 : i32 to index
    %c0_3 = arith.constant 0 : index
    %c0_4 = arith.constant 0 : index
    %5 = vector.load %arg2[%4, %c0_3, %c0_4] : memref<8x128x128xf32, #tpu.memory_space<vmem>>, vector<1x128x128xf32>
    %6 = vector.shape_cast %5 : vector<1x128x128xf32> to vector<128x128xf32>
    %cst = arith.constant dense<0.000000e+00> : vector<16x128xf32>
    %7 = tpu.matmul %3, %6, %cst {dimension_numbers = #tpu.dot_dimension_numbers<[1], [0], [0], [1], [0, 0, 1, 1], [], []>} : vector<16x128xf32>, vector<128x128xf32>, vector<16x128xf32> -> vector<16x128xf32>
    %cst_5 = arith.constant dense<0.000000e+00> : vector<128xf32>
    %8 = vector.multi_reduction <add>, %7, %cst_5 [0] : vector<16x128xf32> to vector<128xf32>
    %9 = vector.shape_cast %8 : vector<128xf32> to vector<1x128xf32>
    %10 = arith.mulf %7, %7 : vector<16x128xf32>
    %cst_6 = arith.constant dense<0.000000e+00> : vector<128xf32>
    %11 = vector.multi_reduction <add>, %10, %cst_6 [0] : vector<16x128xf32> to vector<128xf32>
    %12 = vector.shape_cast %11 : vector<128xf32> to vector<1x128xf32>
    %cst_7 = arith.constant 6.250000e-02 : f32
    %13 = vector.broadcast %cst_7 : f32 to vector<1x128xf32>
    %14 = arith.mulf %9, %13 : vector<1x128xf32>
    %cst_8 = arith.constant 6.250000e-02 : f32
    %15 = vector.broadcast %cst_8 : f32 to vector<1x128xf32>
    %16 = arith.mulf %12, %15 : vector<1x128xf32>
    %17 = arith.mulf %14, %14 : vector<1x128xf32>
    %18 = arith.subf %16, %17 : vector<1x128xf32>
    %cst_9 = arith.constant 0.000000e+00 : f32
    %19 = vector.broadcast %cst_9 : f32 to vector<1x128xf32>
    %20 = arith.maximumf %18, %19 : vector<1x128xf32>
    %21 = arith.index_cast %c0_i32_2 : i32 to index
    %c0_10 = arith.constant 0 : index
    %c0_11 = arith.constant 0 : index
    %22 = vector.load %arg3[%21, %c0_10, %c0_11] : memref<8x2x128xf32, #tpu.memory_space<vmem>>, vector<1x2x128xf32>
    %23 = vector.shape_cast %22 : vector<1x2x128xf32> to vector<2x128xf32>
    %24 = vector.extract_strided_slice %23 {offsets = [0, 0], sizes = [1, 128], strides = [1, 1]} : vector<2x128xf32> to vector<1x128xf32>
    %cst_12 = arith.constant 9.99999974E-6 : f32
    %25 = vector.broadcast %cst_12 : f32 to vector<1x128xf32>
    %26 = arith.addf %20, %25 : vector<1x128xf32>
    %27 = math.rsqrt %26 : vector<1x128xf32>
    %28 = arith.mulf %24, %27 : vector<1x128xf32>
    %29 = vector.extract_strided_slice %23 {offsets = [1, 0], sizes = [1, 128], strides = [1, 1]} : vector<2x128xf32> to vector<1x128xf32>
    %30 = arith.mulf %14, %28 : vector<1x128xf32>
    %31 = arith.subf %29, %30 : vector<1x128xf32>
    %32 = vector.broadcast %28 : vector<1x128xf32> to vector<16x128xf32>
    %33 = arith.mulf %7, %32 : vector<16x128xf32>
    %34 = vector.broadcast %31 : vector<1x128xf32> to vector<16x128xf32>
    %35 = arith.addf %33, %34 : vector<16x128xf32>
    %cst_13 = arith.constant 0.000000e+00 : f32
    %36 = vector.broadcast %cst_13 : f32 to vector<16x128xf32>
    %37 = arith.maximumf %35, %36 : vector<16x128xf32>
    %c1_i32 = arith.constant 1 : i32
    %38 = arith.index_cast %c1_i32 : i32 to index
    %c0_14 = arith.constant 0 : index
    %c0_15 = arith.constant 0 : index
    %39 = vector.load %arg2[%38, %c0_14, %c0_15] : memref<8x128x128xf32, #tpu.memory_space<vmem>>, vector<1x128x128xf32>
    %40 = vector.shape_cast %39 : vector<1x128x128xf32> to vector<128x128xf32>
    %cst_16 = arith.constant dense<0.000000e+00> : vector<16x128xf32>
    %41 = tpu.matmul %37, %40, %cst_16 {dimension_numbers = #tpu.dot_dimension_numbers<[1], [0], [0], [1], [0, 0, 1, 1], [], []>} : vector<16x128xf32>, vector<128x128xf32>, vector<16x128xf32> -> vector<16x128xf32>
    %cst_17 = arith.constant dense<0.000000e+00> : vector<128xf32>
    %42 = vector.multi_reduction <add>, %41, %cst_17 [0] : vector<16x128xf32> to vector<128xf32>
    %43 = vector.shape_cast %42 : vector<128xf32> to vector<1x128xf32>
    %44 = arith.mulf %41, %41 : vector<16x128xf32>
    %cst_18 = arith.constant dense<0.000000e+00> : vector<128xf32>
    %45 = vector.multi_reduction <add>, %44, %cst_18 [0] : vector<16x128xf32> to vector<128xf32>
    %46 = vector.shape_cast %45 : vector<128xf32> to vector<1x128xf32>
    %cst_19 = arith.constant 6.250000e-02 : f32
    %47 = vector.broadcast %cst_19 : f32 to vector<1x128xf32>
    %48 = arith.mulf %43, %47 : vector<1x128xf32>
    %cst_20 = arith.constant 6.250000e-02 : f32
    %49 = vector.broadcast %cst_20 : f32 to vector<1x128xf32>
    %50 = arith.mulf %46, %49 : vector<1x128xf32>
    %51 = arith.mulf %48, %48 : vector<1x128xf32>
    %52 = arith.subf %50, %51 : vector<1x128xf32>
    %cst_21 = arith.constant 0.000000e+00 : f32
    %53 = vector.broadcast %cst_21 : f32 to vector<1x128xf32>
    %54 = arith.maximumf %52, %53 : vector<1x128xf32>
    %55 = arith.index_cast %c1_i32 : i32 to index
    %c0_22 = arith.constant 0 : index
    %c0_23 = arith.constant 0 : index
    %56 = vector.load %arg3[%55, %c0_22, %c0_23] : memref<8x2x128xf32, #tpu.memory_space<vmem>>, vector<1x2x128xf32>
    %57 = vector.shape_cast %56 : vector<1x2x128xf32> to vector<2x128xf32>
    %58 = vector.extract_strided_slice %57 {offsets = [0, 0], sizes = [1, 128], strides = [1, 1]} : vector<2x128xf32> to vector<1x128xf32>
    %cst_24 = arith.constant 9.99999974E-6 : f32
    %59 = vector.broadcast %cst_24 : f32 to vector<1x128xf32>
    %60 = arith.addf %54, %59 : vector<1x128xf32>
    %61 = math.rsqrt %60 : vector<1x128xf32>
    %62 = arith.mulf %58, %61 : vector<1x128xf32>
    %63 = vector.extract_strided_slice %57 {offsets = [1, 0], sizes = [1, 128], strides = [1, 1]} : vector<2x128xf32> to vector<1x128xf32>
    %64 = arith.mulf %48, %62 : vector<1x128xf32>
    %65 = arith.subf %63, %64 : vector<1x128xf32>
    %66 = vector.broadcast %62 : vector<1x128xf32> to vector<16x128xf32>
    %67 = arith.mulf %41, %66 : vector<16x128xf32>
    %68 = vector.broadcast %65 : vector<1x128xf32> to vector<16x128xf32>
    %69 = arith.addf %67, %68 : vector<16x128xf32>
    %cst_25 = arith.constant 0.000000e+00 : f32
    %70 = vector.broadcast %cst_25 : f32 to vector<16x128xf32>
    %71 = arith.maximumf %69, %70 : vector<16x128xf32>
    %c2_i32 = arith.constant 2 : i32
    %72 = arith.index_cast %c2_i32 : i32 to index
    %c0_26 = arith.constant 0 : index
    %c0_27 = arith.constant 0 : index
    %73 = vector.load %arg2[%72, %c0_26, %c0_27] : memref<8x128x128xf32, #tpu.memory_space<vmem>>, vector<1x128x128xf32>
    %74 = vector.shape_cast %73 : vector<1x128x128xf32> to vector<128x128xf32>
    %cst_28 = arith.constant dense<0.000000e+00> : vector<16x128xf32>
    %75 = tpu.matmul %71, %74, %cst_28 {dimension_numbers = #tpu.dot_dimension_numbers<[1], [0], [0], [1], [0, 0, 1, 1], [], []>} : vector<16x128xf32>, vector<128x128xf32>, vector<16x128xf32> -> vector<16x128xf32>
    %cst_29 = arith.constant dense<0.000000e+00> : vector<128xf32>
    %76 = vector.multi_reduction <add>, %75, %cst_29 [0] : vector<16x128xf32> to vector<128xf32>
    %77 = vector.shape_cast %76 : vector<128xf32> to vector<1x128xf32>
    %78 = arith.mulf %75, %75 : vector<16x128xf32>
    %cst_30 = arith.constant dense<0.000000e+00> : vector<128xf32>
    %79 = vector.multi_reduction <add>, %78, %cst_30 [0] : vector<16x128xf32> to vector<128xf32>
    %80 = vector.shape_cast %79 : vector<128xf32> to vector<1x128xf32>
    %cst_31 = arith.constant 6.250000e-02 : f32
    %81 = vector.broadcast %cst_31 : f32 to vector<1x128xf32>
    %82 = arith.mulf %77, %81 : vector<1x128xf32>
    %cst_32 = arith.constant 6.250000e-02 : f32
    %83 = vector.broadcast %cst_32 : f32 to vector<1x128xf32>
    %84 = arith.mulf %80, %83 : vector<1x128xf32>
    %85 = arith.mulf %82, %82 : vector<1x128xf32>
    %86 = arith.subf %84, %85 : vector<1x128xf32>
    %cst_33 = arith.constant 0.000000e+00 : f32
    %87 = vector.broadcast %cst_33 : f32 to vector<1x128xf32>
    %88 = arith.maximumf %86, %87 : vector<1x128xf32>
    %89 = arith.index_cast %c2_i32 : i32 to index
    %c0_34 = arith.constant 0 : index
    %c0_35 = arith.constant 0 : index
    %90 = vector.load %arg3[%89, %c0_34, %c0_35] : memref<8x2x128xf32, #tpu.memory_space<vmem>>, vector<1x2x128xf32>
    %91 = vector.shape_cast %90 : vector<1x2x128xf32> to vector<2x128xf32>
    %92 = vector.extract_strided_slice %91 {offsets = [0, 0], sizes = [1, 128], strides = [1, 1]} : vector<2x128xf32> to vector<1x128xf32>
    %cst_36 = arith.constant 9.99999974E-6 : f32
    %93 = vector.broadcast %cst_36 : f32 to vector<1x128xf32>
    %94 = arith.addf %88, %93 : vector<1x128xf32>
    %95 = math.rsqrt %94 : vector<1x128xf32>
    %96 = arith.mulf %92, %95 : vector<1x128xf32>
    %97 = vector.extract_strided_slice %91 {offsets = [1, 0], sizes = [1, 128], strides = [1, 1]} : vector<2x128xf32> to vector<1x128xf32>
    %98 = arith.mulf %82, %96 : vector<1x128xf32>
    %99 = arith.subf %97, %98 : vector<1x128xf32>
    %100 = vector.broadcast %96 : vector<1x128xf32> to vector<16x128xf32>
    %101 = arith.mulf %75, %100 : vector<16x128xf32>
    %102 = vector.broadcast %99 : vector<1x128xf32> to vector<16x128xf32>
    %103 = arith.addf %101, %102 : vector<16x128xf32>
    %cst_37 = arith.constant 0.000000e+00 : f32
    %104 = vector.broadcast %cst_37 : f32 to vector<16x128xf32>
    %105 = arith.maximumf %103, %104 : vector<16x128xf32>
    %c3_i32 = arith.constant 3 : i32
    %106 = arith.index_cast %c3_i32 : i32 to index
    %c0_38 = arith.constant 0 : index
    %c0_39 = arith.constant 0 : index
    %107 = vector.load %arg2[%106, %c0_38, %c0_39] : memref<8x128x128xf32, #tpu.memory_space<vmem>>, vector<1x128x128xf32>
    %108 = vector.shape_cast %107 : vector<1x128x128xf32> to vector<128x128xf32>
    %cst_40 = arith.constant dense<0.000000e+00> : vector<16x128xf32>
    %109 = tpu.matmul %105, %108, %cst_40 {dimension_numbers = #tpu.dot_dimension_numbers<[1], [0], [0], [1], [0, 0, 1, 1], [], []>} : vector<16x128xf32>, vector<128x128xf32>, vector<16x128xf32> -> vector<16x128xf32>
    %cst_41 = arith.constant dense<0.000000e+00> : vector<128xf32>
    %110 = vector.multi_reduction <add>, %109, %cst_41 [0] : vector<16x128xf32> to vector<128xf32>
    %111 = vector.shape_cast %110 : vector<128xf32> to vector<1x128xf32>
    %112 = arith.mulf %109, %109 : vector<16x128xf32>
    %cst_42 = arith.constant dense<0.000000e+00> : vector<128xf32>
    %113 = vector.multi_reduction <add>, %112, %cst_42 [0] : vector<16x128xf32> to vector<128xf32>
    %114 = vector.shape_cast %113 : vector<128xf32> to vector<1x128xf32>
    %cst_43 = arith.constant 6.250000e-02 : f32
    %115 = vector.broadcast %cst_43 : f32 to vector<1x128xf32>
    %116 = arith.mulf %111, %115 : vector<1x128xf32>
    %cst_44 = arith.constant 6.250000e-02 : f32
    %117 = vector.broadcast %cst_44 : f32 to vector<1x128xf32>
    %118 = arith.mulf %114, %117 : vector<1x128xf32>
    %119 = arith.mulf %116, %116 : vector<1x128xf32>
    %120 = arith.subf %118, %119 : vector<1x128xf32>
    %cst_45 = arith.constant 0.000000e+00 : f32
    %121 = vector.broadcast %cst_45 : f32 to vector<1x128xf32>
    %122 = arith.maximumf %120, %121 : vector<1x128xf32>
    %123 = arith.index_cast %c3_i32 : i32 to index
    %c0_46 = arith.constant 0 : index
    %c0_47 = arith.constant 0 : index
    %124 = vector.load %arg3[%123, %c0_46, %c0_47] : memref<8x2x128xf32, #tpu.memory_space<vmem>>, vector<1x2x128xf32>
    %125 = vector.shape_cast %124 : vector<1x2x128xf32> to vector<2x128xf32>
    %126 = vector.extract_strided_slice %125 {offsets = [0, 0], sizes = [1, 128], strides = [1, 1]} : vector<2x128xf32> to vector<1x128xf32>
    %cst_48 = arith.constant 9.99999974E-6 : f32
    %127 = vector.broadcast %cst_48 : f32 to vector<1x128xf32>
    %128 = arith.addf %122, %127 : vector<1x128xf32>
    %129 = math.rsqrt %128 : vector<1x128xf32>
    %130 = arith.mulf %126, %129 : vector<1x128xf32>
    %131 = vector.extract_strided_slice %125 {offsets = [1, 0], sizes = [1, 128], strides = [1, 1]} : vector<2x128xf32> to vector<1x128xf32>
    %132 = arith.mulf %116, %130 : vector<1x128xf32>
    %133 = arith.subf %131, %132 : vector<1x128xf32>
    %134 = vector.broadcast %130 : vector<1x128xf32> to vector<16x128xf32>
    %135 = arith.mulf %109, %134 : vector<16x128xf32>
    %136 = vector.broadcast %133 : vector<1x128xf32> to vector<16x128xf32>
    %137 = arith.addf %135, %136 : vector<16x128xf32>
    %cst_49 = arith.constant 0.000000e+00 : f32
    %138 = vector.broadcast %cst_49 : f32 to vector<16x128xf32>
    %139 = arith.maximumf %137, %138 : vector<16x128xf32>
    %c4_i32 = arith.constant 4 : i32
    %140 = arith.index_cast %c4_i32 : i32 to index
    %c0_50 = arith.constant 0 : index
    %c0_51 = arith.constant 0 : index
    %141 = vector.load %arg2[%140, %c0_50, %c0_51] : memref<8x128x128xf32, #tpu.memory_space<vmem>>, vector<1x128x128xf32>
    %142 = vector.shape_cast %141 : vector<1x128x128xf32> to vector<128x128xf32>
    %cst_52 = arith.constant dense<0.000000e+00> : vector<16x128xf32>
    %143 = tpu.matmul %139, %142, %cst_52 {dimension_numbers = #tpu.dot_dimension_numbers<[1], [0], [0], [1], [0, 0, 1, 1], [], []>} : vector<16x128xf32>, vector<128x128xf32>, vector<16x128xf32> -> vector<16x128xf32>
    %cst_53 = arith.constant dense<0.000000e+00> : vector<128xf32>
    %144 = vector.multi_reduction <add>, %143, %cst_53 [0] : vector<16x128xf32> to vector<128xf32>
    %145 = vector.shape_cast %144 : vector<128xf32> to vector<1x128xf32>
    %146 = arith.mulf %143, %143 : vector<16x128xf32>
    %cst_54 = arith.constant dense<0.000000e+00> : vector<128xf32>
    %147 = vector.multi_reduction <add>, %146, %cst_54 [0] : vector<16x128xf32> to vector<128xf32>
    %148 = vector.shape_cast %147 : vector<128xf32> to vector<1x128xf32>
    %cst_55 = arith.constant 6.250000e-02 : f32
    %149 = vector.broadcast %cst_55 : f32 to vector<1x128xf32>
    %150 = arith.mulf %145, %149 : vector<1x128xf32>
    %cst_56 = arith.constant 6.250000e-02 : f32
    %151 = vector.broadcast %cst_56 : f32 to vector<1x128xf32>
    %152 = arith.mulf %148, %151 : vector<1x128xf32>
    %153 = arith.mulf %150, %150 : vector<1x128xf32>
    %154 = arith.subf %152, %153 : vector<1x128xf32>
    %cst_57 = arith.constant 0.000000e+00 : f32
    %155 = vector.broadcast %cst_57 : f32 to vector<1x128xf32>
    %156 = arith.maximumf %154, %155 : vector<1x128xf32>
    %157 = arith.index_cast %c4_i32 : i32 to index
    %c0_58 = arith.constant 0 : index
    %c0_59 = arith.constant 0 : index
    %158 = vector.load %arg3[%157, %c0_58, %c0_59] : memref<8x2x128xf32, #tpu.memory_space<vmem>>, vector<1x2x128xf32>
    %159 = vector.shape_cast %158 : vector<1x2x128xf32> to vector<2x128xf32>
    %160 = vector.extract_strided_slice %159 {offsets = [0, 0], sizes = [1, 128], strides = [1, 1]} : vector<2x128xf32> to vector<1x128xf32>
    %cst_60 = arith.constant 9.99999974E-6 : f32
    %161 = vector.broadcast %cst_60 : f32 to vector<1x128xf32>
    %162 = arith.addf %156, %161 : vector<1x128xf32>
    %163 = math.rsqrt %162 : vector<1x128xf32>
    %164 = arith.mulf %160, %163 : vector<1x128xf32>
    %165 = vector.extract_strided_slice %159 {offsets = [1, 0], sizes = [1, 128], strides = [1, 1]} : vector<2x128xf32> to vector<1x128xf32>
    %166 = arith.mulf %150, %164 : vector<1x128xf32>
    %167 = arith.subf %165, %166 : vector<1x128xf32>
    %168 = vector.broadcast %164 : vector<1x128xf32> to vector<16x128xf32>
    %169 = arith.mulf %143, %168 : vector<16x128xf32>
    %170 = vector.broadcast %167 : vector<1x128xf32> to vector<16x128xf32>
    %171 = arith.addf %169, %170 : vector<16x128xf32>
    %cst_61 = arith.constant 0.000000e+00 : f32
    %172 = vector.broadcast %cst_61 : f32 to vector<16x128xf32>
    %173 = arith.maximumf %171, %172 : vector<16x128xf32>
    %c5_i32 = arith.constant 5 : i32
    %174 = arith.index_cast %c5_i32 : i32 to index
    %c0_62 = arith.constant 0 : index
    %c0_63 = arith.constant 0 : index
    %175 = vector.load %arg2[%174, %c0_62, %c0_63] : memref<8x128x128xf32, #tpu.memory_space<vmem>>, vector<1x128x128xf32>
    %176 = vector.shape_cast %175 : vector<1x128x128xf32> to vector<128x128xf32>
    %cst_64 = arith.constant dense<0.000000e+00> : vector<16x128xf32>
    %177 = tpu.matmul %173, %176, %cst_64 {dimension_numbers = #tpu.dot_dimension_numbers<[1], [0], [0], [1], [0, 0, 1, 1], [], []>} : vector<16x128xf32>, vector<128x128xf32>, vector<16x128xf32> -> vector<16x128xf32>
    %cst_65 = arith.constant dense<0.000000e+00> : vector<128xf32>
    %178 = vector.multi_reduction <add>, %177, %cst_65 [0] : vector<16x128xf32> to vector<128xf32>
    %179 = vector.shape_cast %178 : vector<128xf32> to vector<1x128xf32>
    %180 = arith.mulf %177, %177 : vector<16x128xf32>
    %cst_66 = arith.constant dense<0.000000e+00> : vector<128xf32>
    %181 = vector.multi_reduction <add>, %180, %cst_66 [0] : vector<16x128xf32> to vector<128xf32>
    %182 = vector.shape_cast %181 : vector<128xf32> to vector<1x128xf32>
    %cst_67 = arith.constant 6.250000e-02 : f32
    %183 = vector.broadcast %cst_67 : f32 to vector<1x128xf32>
    %184 = arith.mulf %179, %183 : vector<1x128xf32>
    %cst_68 = arith.constant 6.250000e-02 : f32
    %185 = vector.broadcast %cst_68 : f32 to vector<1x128xf32>
    %186 = arith.mulf %182, %185 : vector<1x128xf32>
    %187 = arith.mulf %184, %184 : vector<1x128xf32>
    %188 = arith.subf %186, %187 : vector<1x128xf32>
    %cst_69 = arith.constant 0.000000e+00 : f32
    %189 = vector.broadcast %cst_69 : f32 to vector<1x128xf32>
    %190 = arith.maximumf %188, %189 : vector<1x128xf32>
    %191 = arith.index_cast %c5_i32 : i32 to index
    %c0_70 = arith.constant 0 : index
    %c0_71 = arith.constant 0 : index
    %192 = vector.load %arg3[%191, %c0_70, %c0_71] : memref<8x2x128xf32, #tpu.memory_space<vmem>>, vector<1x2x128xf32>
    %193 = vector.shape_cast %192 : vector<1x2x128xf32> to vector<2x128xf32>
    %194 = vector.extract_strided_slice %193 {offsets = [0, 0], sizes = [1, 128], strides = [1, 1]} : vector<2x128xf32> to vector<1x128xf32>
    %cst_72 = arith.constant 9.99999974E-6 : f32
    %195 = vector.broadcast %cst_72 : f32 to vector<1x128xf32>
    %196 = arith.addf %190, %195 : vector<1x128xf32>
    %197 = math.rsqrt %196 : vector<1x128xf32>
    %198 = arith.mulf %194, %197 : vector<1x128xf32>
    %199 = vector.extract_strided_slice %193 {offsets = [1, 0], sizes = [1, 128], strides = [1, 1]} : vector<2x128xf32> to vector<1x128xf32>
    %200 = arith.mulf %184, %198 : vector<1x128xf32>
    %201 = arith.subf %199, %200 : vector<1x128xf32>
    %202 = vector.broadcast %198 : vector<1x128xf32> to vector<16x128xf32>
    %203 = arith.mulf %177, %202 : vector<16x128xf32>
    %204 = vector.broadcast %201 : vector<1x128xf32> to vector<16x128xf32>
    %205 = arith.addf %203, %204 : vector<16x128xf32>
    %cst_73 = arith.constant 0.000000e+00 : f32
    %206 = vector.broadcast %cst_73 : f32 to vector<16x128xf32>
    %207 = arith.maximumf %205, %206 : vector<16x128xf32>
    %c6_i32 = arith.constant 6 : i32
    %208 = arith.index_cast %c6_i32 : i32 to index
    %c0_74 = arith.constant 0 : index
    %c0_75 = arith.constant 0 : index
    %209 = vector.load %arg2[%208, %c0_74, %c0_75] : memref<8x128x128xf32, #tpu.memory_space<vmem>>, vector<1x128x128xf32>
    %210 = vector.shape_cast %209 : vector<1x128x128xf32> to vector<128x128xf32>
    %cst_76 = arith.constant dense<0.000000e+00> : vector<16x128xf32>
    %211 = tpu.matmul %207, %210, %cst_76 {dimension_numbers = #tpu.dot_dimension_numbers<[1], [0], [0], [1], [0, 0, 1, 1], [], []>} : vector<16x128xf32>, vector<128x128xf32>, vector<16x128xf32> -> vector<16x128xf32>
    %cst_77 = arith.constant dense<0.000000e+00> : vector<128xf32>
    %212 = vector.multi_reduction <add>, %211, %cst_77 [0] : vector<16x128xf32> to vector<128xf32>
    %213 = vector.shape_cast %212 : vector<128xf32> to vector<1x128xf32>
    %214 = arith.mulf %211, %211 : vector<16x128xf32>
    %cst_78 = arith.constant dense<0.000000e+00> : vector<128xf32>
    %215 = vector.multi_reduction <add>, %214, %cst_78 [0] : vector<16x128xf32> to vector<128xf32>
    %216 = vector.shape_cast %215 : vector<128xf32> to vector<1x128xf32>
    %cst_79 = arith.constant 6.250000e-02 : f32
    %217 = vector.broadcast %cst_79 : f32 to vector<1x128xf32>
    %218 = arith.mulf %213, %217 : vector<1x128xf32>
    %cst_80 = arith.constant 6.250000e-02 : f32
    %219 = vector.broadcast %cst_80 : f32 to vector<1x128xf32>
    %220 = arith.mulf %216, %219 : vector<1x128xf32>
    %221 = arith.mulf %218, %218 : vector<1x128xf32>
    %222 = arith.subf %220, %221 : vector<1x128xf32>
    %cst_81 = arith.constant 0.000000e+00 : f32
    %223 = vector.broadcast %cst_81 : f32 to vector<1x128xf32>
    %224 = arith.maximumf %222, %223 : vector<1x128xf32>
    %225 = arith.index_cast %c6_i32 : i32 to index
    %c0_82 = arith.constant 0 : index
    %c0_83 = arith.constant 0 : index
    %226 = vector.load %arg3[%225, %c0_82, %c0_83] : memref<8x2x128xf32, #tpu.memory_space<vmem>>, vector<1x2x128xf32>
    %227 = vector.shape_cast %226 : vector<1x2x128xf32> to vector<2x128xf32>
    %228 = vector.extract_strided_slice %227 {offsets = [0, 0], sizes = [1, 128], strides = [1, 1]} : vector<2x128xf32> to vector<1x128xf32>
    %cst_84 = arith.constant 9.99999974E-6 : f32
    %229 = vector.broadcast %cst_84 : f32 to vector<1x128xf32>
    %230 = arith.addf %224, %229 : vector<1x128xf32>
    %231 = math.rsqrt %230 : vector<1x128xf32>
    %232 = arith.mulf %228, %231 : vector<1x128xf32>
    %233 = vector.extract_strided_slice %227 {offsets = [1, 0], sizes = [1, 128], strides = [1, 1]} : vector<2x128xf32> to vector<1x128xf32>
    %234 = arith.mulf %218, %232 : vector<1x128xf32>
    %235 = arith.subf %233, %234 : vector<1x128xf32>
    %236 = vector.broadcast %232 : vector<1x128xf32> to vector<16x128xf32>
    %237 = arith.mulf %211, %236 : vector<16x128xf32>
    %238 = vector.broadcast %235 : vector<1x128xf32> to vector<16x128xf32>
    %239 = arith.addf %237, %238 : vector<16x128xf32>
    %cst_85 = arith.constant 0.000000e+00 : f32
    %240 = vector.broadcast %cst_85 : f32 to vector<16x128xf32>
    %241 = arith.maximumf %239, %240 : vector<16x128xf32>
    %c7_i32 = arith.constant 7 : i32
    %242 = arith.index_cast %c7_i32 : i32 to index
    %c0_86 = arith.constant 0 : index
    %c0_87 = arith.constant 0 : index
    %243 = vector.load %arg2[%242, %c0_86, %c0_87] : memref<8x128x128xf32, #tpu.memory_space<vmem>>, vector<1x128x128xf32>
    %244 = vector.shape_cast %243 : vector<1x128x128xf32> to vector<128x128xf32>
    %cst_88 = arith.constant dense<0.000000e+00> : vector<16x128xf32>
    %245 = tpu.matmul %241, %244, %cst_88 {dimension_numbers = #tpu.dot_dimension_numbers<[1], [0], [0], [1], [0, 0, 1, 1], [], []>} : vector<16x128xf32>, vector<128x128xf32>, vector<16x128xf32> -> vector<16x128xf32>
    %cst_89 = arith.constant dense<0.000000e+00> : vector<128xf32>
    %246 = vector.multi_reduction <add>, %245, %cst_89 [0] : vector<16x128xf32> to vector<128xf32>
    %247 = vector.shape_cast %246 : vector<128xf32> to vector<1x128xf32>
    %248 = arith.mulf %245, %245 : vector<16x128xf32>
    %cst_90 = arith.constant dense<0.000000e+00> : vector<128xf32>
    %249 = vector.multi_reduction <add>, %248, %cst_90 [0] : vector<16x128xf32> to vector<128xf32>
    %250 = vector.shape_cast %249 : vector<128xf32> to vector<1x128xf32>
    %cst_91 = arith.constant 6.250000e-02 : f32
    %251 = vector.broadcast %cst_91 : f32 to vector<1x128xf32>
    %252 = arith.mulf %247, %251 : vector<1x128xf32>
    %cst_92 = arith.constant 6.250000e-02 : f32
    %253 = vector.broadcast %cst_92 : f32 to vector<1x128xf32>
    %254 = arith.mulf %250, %253 : vector<1x128xf32>
    %255 = arith.mulf %252, %252 : vector<1x128xf32>
    %256 = arith.subf %254, %255 : vector<1x128xf32>
    %cst_93 = arith.constant 0.000000e+00 : f32
    %257 = vector.broadcast %cst_93 : f32 to vector<1x128xf32>
    %258 = arith.maximumf %256, %257 : vector<1x128xf32>
    %259 = arith.index_cast %c7_i32 : i32 to index
    %c0_94 = arith.constant 0 : index
    %c0_95 = arith.constant 0 : index
    %260 = vector.load %arg3[%259, %c0_94, %c0_95] : memref<8x2x128xf32, #tpu.memory_space<vmem>>, vector<1x2x128xf32>
    %261 = vector.shape_cast %260 : vector<1x2x128xf32> to vector<2x128xf32>
    %262 = vector.extract_strided_slice %261 {offsets = [0, 0], sizes = [1, 128], strides = [1, 1]} : vector<2x128xf32> to vector<1x128xf32>
    %cst_96 = arith.constant 9.99999974E-6 : f32
    %263 = vector.broadcast %cst_96 : f32 to vector<1x128xf32>
    %264 = arith.addf %258, %263 : vector<1x128xf32>
    %265 = math.rsqrt %264 : vector<1x128xf32>
    %266 = arith.mulf %262, %265 : vector<1x128xf32>
    %267 = vector.extract_strided_slice %261 {offsets = [1, 0], sizes = [1, 128], strides = [1, 1]} : vector<2x128xf32> to vector<1x128xf32>
    %268 = arith.mulf %252, %266 : vector<1x128xf32>
    %269 = arith.subf %267, %268 : vector<1x128xf32>
    %270 = vector.broadcast %266 : vector<1x128xf32> to vector<16x128xf32>
    %271 = arith.mulf %245, %270 : vector<16x128xf32>
    %272 = vector.broadcast %269 : vector<1x128xf32> to vector<16x128xf32>
    %273 = arith.addf %271, %272 : vector<16x128xf32>
    %cst_97 = arith.constant 0.000000e+00 : f32
    %274 = vector.broadcast %cst_97 : f32 to vector<16x128xf32>
    %275 = arith.maximumf %273, %274 : vector<16x128xf32>
    %c8_i32 = arith.constant 8 : i32
    %c0_98 = arith.constant 0 : index
    %c0_99 = arith.constant 0 : index
    %276 = vector.load %arg4[%c0_98, %c0_99] : memref<16x128xf32, #tpu.memory_space<vmem>>, vector<16x128xf32>
    tpu.vector_store %arg4[%c0_98, %c0_99], %275 {strides = array<i32>} : memref<16x128xf32, #tpu.memory_space<vmem>>, vector<16x128xf32>,
    return
  }
  func.func @transform_0(%arg0: i32) -> (i32, i32) {
    %c0_i32 = arith.constant 0 : i32
    %c0_i32_0 = arith.constant 0 : i32
    %c0_i32_1 = arith.constant 0 : i32
    return %c0_i32, %c0_i32_0 : i32, i32
  }
  func.func @transform_1(%arg0: i32) -> (i32, i32, i32) {
    %c0_i32 = arith.constant 0 : i32
    %c0_i32_0 = arith.constant 0 : i32
    %c0_i32_1 = arith.constant 0 : i32
    return %arg0, %c0_i32, %c0_i32_0 : i32, i32, i32
  }
  func.func @transform_2(%arg0: i32) -> (i32, i32, i32) {
    %c0_i32 = arith.constant 0 : i32
    %c0_i32_0 = arith.constant 0 : i32
    %c0_i32_1 = arith.constant 0 : i32
    return %arg0, %c0_i32, %c0_i32_0 : i32, i32, i32
  }
  func.func @transform_3(%arg0: i32) -> (i32, i32) {
    %c0_i32 = arith.constant 0 : i32
    %c0_i32_0 = arith.constant 0 : i32
    %c0_i32_1 = arith.constant 0 : i32
    return %c0_i32, %c0_i32_0 : i32, i32
  }
}

</mosaic_0001>

<bundles_post_ra>
// kernel: tpu_custom_call.1
= control target key start
LH: loop header
LB: loop body
LE: loop exit
PB: predicated region body
PF: predicated region fallthrough
CT: control target
= control target key end

     0   :  { %8 = vsyncpa [#allocation3], 0  ;;  %s1783_s0 = inlined_call_operand.hbm [shape: f32[16,128], index: 0, kind: input, shape index: {}]   ;;  %s1784_s1 = inlined_call_operand.hbm [shape: f32[8,128,128], index: 1, kind: input, shape index: {}]   ;;  %s1785_s2 = inlined_call_operand.hbm [shape: f32[8,2,128], index: 2, kind: input, shape index: {}]   ;;  %s1786_s3 = inlined_call_operand.hbm [shape: f32[16,128], index: 3, kind: output, shape index: {}]  }
   0x1   :  { %9 = vsyncpa [#allocation6], 0 }
   0x2   :  { %10 = vsyncpa [#allocation4], 0  ;;  %s1714_s12 = smov [#allocation5]   ;;  %s1715_s14 = smov [#allocation2]  }
   0x3   :  { %s28_s13 = sshll.u32 %s1714_s12, 4  ;;  %s16_s15 = sshll.u32 %s1715_s14, 4  ;;  %s29_s13 = int_to_ptr.vmem [resolvable:$true] %s28_s13  ;;  %s17_s15 = int_to_ptr.vmem [resolvable:$true] %s16_s15 }
   0x4   :  { %s1636_s16 = scalar_lea.vmem %s29_s13, 16384  ;;  %p1641_p1 = scmp.lt.s32.totalorder %s29_s13, %s29_s13 }
   0x5   :  { %p1637_p0 = scmp.ne.s32.totalorder %s29_s13, %s1636_s16  ;;  %p1642_p2 = scmp.lt.s32.totalorder %s1636_s16, %s1636_s16 }
   0x7   :  { %p1643_p3 = por %p1642_p2, %p1641_p1 }
   0x9   :  { %p1644_p4 = pnand %p1643_p3, %p1637_p0 }
   0xb   :  { %1647 = shalt.err (!%p1644_p4)
}
   0xc   :  { %s1716_s17 = smov 128   ;;  %s1717_s18 = smov 8  }
   0xd   :  { %34 = dma.hbm_to_vmem [thread:$0]  %s1784_s1, 16384, %s29_s13, [#allocation6], %s1716_s17, %s1716_s17, %s1717_s18  }
   0xe   :  { %s1656_s21 = scalar_lea.vmem %s17_s15, 256  ;;  %p1661_p6 = scmp.lt.s32.totalorder %s17_s15, %s17_s15 }
   0xf   :  { %p1657_p5 = scmp.ne.s32.totalorder %s17_s15, %s1656_s21  ;;  %p1662_p7 = scmp.lt.s32.totalorder %s1656_s21, %s1656_s21 }
  0x11   :  { %p1663_p8 = por %p1662_p7, %p1661_p6 }
  0x13   :  { %p1664_p9 = pnand %p1663_p8, %p1657_p5 }
  0x15   :  { %1667 = shalt.err (!%p1664_p9)
}
  0x16   :  { %22 = dma.hbm_to_vmem [thread:$0]  %s1783_s0, 256, %s17_s15, [#allocation3], %s1716_s17, %s1716_s17, %s1717_s18  }
  0x17   :  { %s1718_s24 = smov [#allocation7]  }
  0x18   :  { %s40_s25 = sshll.u32 %s1718_s24, 4  ;;  %s41_s25 = int_to_ptr.vmem [resolvable:$true] %s40_s25 }
  0x19   :  { %s1676_s26 = scalar_lea.vmem %s41_s25, 256  ;;  %p1681_p11 = scmp.lt.s32.totalorder %s41_s25, %s41_s25 }
  0x1a   :  { %p1677_p10 = scmp.ne.s32.totalorder %s41_s25, %s1676_s26  ;;  %p1682_p12 = scmp.lt.s32.totalorder %s1676_s26, %s1676_s26 }
  0x1c   :  { %p1683_p13 = por %p1682_p12, %p1681_p11 }
  0x1e   :  { %p1684_p0 = pnand %p1683_p13, %p1677_p10 }
  0x20   :  { %1687 = shalt.err (!%p1684_p0)
}
  0x21   :  { %s1719_s1 = smov 32   ;;  %s1720_s27 = smov 2  }
  0x22   :  { %46 = dma.hbm_to_vmem [thread:$0]  %s1785_s2, 256, %s41_s25, [#allocation6], %s1719_s1, %s1719_s1, %s1720_s27  }
  0x23   :  { %1708 = dma.done.wait [#allocation3], 256  }
  0x24   :  { %1709 = vsyncadd [#allocation3], 4294967040 }
  0x25   :  { %1710 = dma.done.wait [#allocation6], 16640  }
  0x26   :  { %1711 = vsyncadd [#allocation6], 4294950656  ;;  %v81_v0 = vld [vmem:[#allocation5 + $0x78] sm:$0xff]  ;;  %v80_v1 = vld [vmem:[#allocation5 + $0x70] sm:$0xff]  ;;  %v187_v58 = vlaneseq  ;;  %s1721_s0 = smov [#allocation8]  }
  0x27   :  { %1324 = vmatprep.subr.mxu0 %v81_v0  ;;  %v79_v2 = vld [vmem:[#allocation5 + $0x68] sm:$0xff]  ;;  %v78_v3 = vld [vmem:[#allocation5 + $0x60] sm:$0xff]  ;;  %v60_v4 = vld [vmem:[#allocation2] sm:$0xff]  ;;  %s1167_s2 = sshll.u32 %s1721_s0, 4  ;;  %s1168_s2 = int_to_ptr.vmem [resolvable:$true] %s1167_s2 }
  0x28   :  { %1325 = vmatpush3.msra.mxu0 %v81_v0  ;;  %v77_v5 = vld [vmem:[#allocation5 + $0x58] sm:$0xff]  ;;  %1356 = vmatprep.mubr.f32.mxu0 %v60_v4  ;;  %v76_v6 = vld [vmem:[#allocation5 + $0x50] sm:$0xff]  ;;  %v75_v7 = vld [vmem:[#allocation5 + $0x48] sm:$0xff]  ;;  %v188_v59 = vshrl.u32 %v187_v58, 7  ;;  %s1688_s30 = scalar_lea.vmem %s1168_s2, 256  ;;  %p1693_p2 = scmp.lt.s32.totalorder %s1168_s2, %s1168_s2 }
  0x29   :  { %1326 = vmatprep.subr.mxu0 %v80_v1  ;;  %v74_v8 = vld [vmem:[#allocation5 + $0x40] sm:$0xff]  ;;  %v73_v9 = vld [vmem:[#allocation5 + $0x38] sm:$0xff]  ;;  %v72_v10 = vld [vmem:[#allocation5 + $0x30] sm:$0xff]  ;;  %p1689_p1 = scmp.ne.s32.totalorder %s1168_s2, %s1688_s30  ;;  %p1694_p3 = scmp.lt.s32.totalorder %s1688_s30, %s1688_s30 }
  0x2a   :  { %1327 = vmatpush3.msra.mxu0 %v80_v1  ;;  %v71_v11 = vld [vmem:[#allocation5 + $0x28] sm:$0xff]  ;;  %v70_v12 = vld [vmem:[#allocation5 + $0x20] sm:$0xff]  ;;  %v69_v13 = vld [vmem:[#allocation5 + $0x18] sm:$0xff]  ;;  %v1757_v63 = vsub.s32 0, %v188_v59 }
  0x2b   :  { %1328 = vmatprep.subr.mxu0 %v79_v2  ;;  %v68_v14 = vld [vmem:[#allocation5 + $0x10] sm:$0xff]  ;;  %v67_v15 = vld [vmem:[#allocation5 + $0x8] sm:$0xff]  ;;  %v66_v16 = vld [vmem:[#allocation5] sm:$0xff]  ;;  %p1695_p4 = por %p1694_p3, %p1693_p2 }
  0x2c   :  { %1329 = vmatpush3.msra.mxu0 %v79_v2  ;;  %v61_v17 = vld [vmem:[#allocation2 + $0x8] sm:$0xff]  ;;  %v216_v19 = vld [vmem:[#allocation5 + $0xf0] sm:$0xff]  ;;  %v215_v20 = vld [vmem:[#allocation5 + $0xe8] sm:$0xff] }
  0x2d   :  { %1330 = vmatprep.subr.mxu0 %v78_v3  ;;  %v217_v18 = vld [vmem:[#allocation5 + $0xf8] sm:$0xff]  ;;  %v214_v21 = vld [vmem:[#allocation5 + $0xe0] sm:$0xff]  ;;  %v212_v23 = vld [vmem:[#allocation5 + $0xd0] sm:$0xff]  ;;  %p1696_p5 = pnand %p1695_p4, %p1689_p1 }
  0x2e   :  { %1331 = vmatpush3.msra.mxu0 %v78_v3  ;;  %1359 = vmatprep.subr.mxu1 %v217_v18  ;;  %v213_v22 = vld [vmem:[#allocation5 + $0xd8] sm:$0xff]  ;;  %v211_v24 = vld [vmem:[#allocation5 + $0xc8] sm:$0xff]  ;;  %v210_v25 = vld [vmem:[#allocation5 + $0xc0] sm:$0xff]  ;;  %v1760_v3 = vsub.s32 1, %v188_v59 }
  0x2f   :  { %1332 = vmatprep.subr.mxu0 %v77_v5  ;;  %1360 = vmatpush3.msra.mxu1 %v217_v18  ;;  %v209_v26 = vld [vmem:[#allocation5 + $0xb8] sm:$0xff]  ;;  %v208_v27 = vld [vmem:[#allocation5 + $0xb0] sm:$0xff]  ;;  %v207_v28 = vld [vmem:[#allocation5 + $0xa8] sm:$0xff] }
  0x30   :  { %1333 = vmatpush3.msra.mxu0 %v77_v5  ;;  %1361 = vmatprep.subr.mxu1 %v216_v19  ;;  %v206_v29 = vld [vmem:[#allocation5 + $0xa0] sm:$0xff]  ;;  %v205_v30 = vld [vmem:[#allocation5 + $0x98] sm:$0xff]  ;;  %v204_v31 = vld [vmem:[#allocation5 + $0x90] sm:$0xff] }
  0x31   :  { %1334 = vmatprep.subr.mxu0 %v76_v6  ;;  %1362 = vmatpush3.msra.mxu1 %v216_v19  ;;  %v203_v32 = vld [vmem:[#allocation5 + $0x88] sm:$0xff]  ;;  %v202_v33 = vld [vmem:[#allocation5 + $0x80] sm:$0xff] }
  0x32   :  { %1335 = vmatpush3.msra.mxu0 %v76_v6  ;;  %1363 = vmatprep.subr.mxu1 %v215_v20  ;;  %v178_v60 = vld [vmem:[#allocation7] sm:$0x3]  ;;  %v348_v18 = vld [vmem:[#allocation5 + $0x148] sm:$0xff] }
  0x33   :  { %1336 = vmatprep.subr.mxu0 %v75_v7  ;;  %1364 = vmatpush3.msra.mxu1 %v215_v20  ;;  %v347_v19 = vld [vmem:[#allocation5 + $0x140] sm:$0xff]  ;;  %v346_v20 = vld [vmem:[#allocation5 + $0x138] sm:$0xff] }
  0x34   :  { %1337 = vmatpush3.msra.mxu0 %v75_v7  ;;  %1365 = vmatprep.subr.mxu1 %v214_v21 }
  0x35   :  { %1338 = vmatprep.subr.mxu0 %v74_v8  ;;  %1366 = vmatpush3.msra.mxu1 %v214_v21  ;;  %v345_v21 = vld [vmem:[#allocation5 + $0x130] sm:$0xff] }
  0x36   :  { %1339 = vmatpush3.msra.mxu0 %v74_v8  ;;  %1367 = vmatprep.subr.mxu1 %v213_v22 }
  0x37   :  { %1340 = vmatprep.subr.mxu0 %v73_v9  ;;  %1368 = vmatpush3.msra.mxu1 %v213_v22  ;;  %v344_v22 = vld [vmem:[#allocation5 + $0x128] sm:$0xff] }
  0x38   :  { %1341 = vmatpush3.msra.mxu0 %v73_v9  ;;  %1369 = vmatprep.subr.mxu1 %v212_v23 }
  0x39   :  { %1342 = vmatprep.subr.mxu0 %v72_v10  ;;  %1370 = vmatpush3.msra.mxu1 %v212_v23  ;;  %v343_v23 = vld [vmem:[#allocation5 + $0x120] sm:$0xff] }
  0x3a   :  { %1343 = vmatpush3.msra.mxu0 %v72_v10  ;;  %1371 = vmatprep.subr.mxu1 %v211_v24 }
  0x3b   :  { %1344 = vmatprep.subr.mxu0 %v71_v11  ;;  %1372 = vmatpush3.msra.mxu1 %v211_v24  ;;  %v342_v24 = vld [vmem:[#allocation5 + $0x118] sm:$0xff] }
  0x3c   :  { %1345 = vmatpush3.msra.mxu0 %v71_v11  ;;  %1373 = vmatprep.subr.mxu1 %v210_v25 }
  0x3d   :  { %1346 = vmatprep.subr.mxu0 %v70_v12  ;;  %1374 = vmatpush3.msra.mxu1 %v210_v25  ;;  %v341_v25 = vld [vmem:[#allocation5 + $0x110] sm:$0xff] }
  0x3e   :  { %1347 = vmatpush3.msra.mxu0 %v70_v12  ;;  %1375 = vmatprep.subr.mxu1 %v209_v26  ;;  %v354_v12 = vld [vmem:[#allocation5 + $0x178] sm:$0xff] }
  0x3f   :  { %1348 = vmatprep.subr.mxu0 %v69_v13  ;;  %1376 = vmatpush3.msra.mxu1 %v209_v26  ;;  %v340_v26 = vld [vmem:[#allocation5 + $0x108] sm:$0xff] }
  0x40   :  { %1349 = vmatpush3.msra.mxu0 %v69_v13  ;;  %1377 = vmatprep.subr.mxu1 %v208_v27  ;;  %v353_v13 = vld [vmem:[#allocation5 + $0x170] sm:$0xff] }
  0x41   :  { %1350 = vmatprep.subr.mxu0 %v68_v14  ;;  %1378 = vmatpush3.msra.mxu1 %v208_v27  ;;  %v339_v27 = vld [vmem:[#allocation5 + $0x100] sm:$0xff] }
  0x42   :  { %1351 = vmatpush3.msra.mxu0 %v68_v14  ;;  %1379 = vmatprep.subr.mxu1 %v207_v28  ;;  %v352_v14 = vld [vmem:[#allocation5 + $0x168] sm:$0xff] }
  0x43   :  { %1352 = vmatprep.subr.mxu0 %v67_v15  ;;  %1380 = vmatpush3.msra.mxu1 %v207_v28 }
  0x44   :  { %1353 = vmatpush3.msra.mxu0 %v67_v15  ;;  %1381 = vmatprep.subr.mxu1 %v206_v29  ;;  %v351_v15 = vld [vmem:[#allocation5 + $0x160] sm:$0xff] }
  0x45   :  { %1354 = vmatprep.subr.mxu0 %v66_v16  ;;  %1382 = vmatpush3.msra.mxu1 %v206_v29 }
  0x46   :  { %1355 = vmatpush3.msra.mxu0 %v66_v16  ;;  %1383 = vmatprep.subr.mxu1 %v205_v30  ;;  %v350_v16 = vld [vmem:[#allocation5 + $0x158] sm:$0xff] }
  0x47   :  { %1357 = vmatmul.mubr.f32.vlgmr.msra.gmra.mxu0 %v61_v17  ;;  %1384 = vmatpush3.msra.mxu1 %v205_v30  ;;  %v349_v17 = vld [vmem:[#allocation5 + $0x150] sm:$0xff] }
  0x48   :  { %1385 = vmatprep.subr.mxu1 %v204_v31  ;;  %1394 = vmatprep.subr.mxu0 %v354_v12 }
  0x49   :  { %1386 = vmatpush3.msra.mxu1 %v204_v31  ;;  %1395 = vmatpush3.msra.mxu0 %v354_v12  ;;  %v483_v12 = vld [vmem:[#allocation5 + $0x1b8] sm:$0xff] }
  0x4a   :  { %1387 = vmatprep.subr.mxu1 %v203_v32  ;;  %1396 = vmatprep.subr.mxu0 %v353_v13 }
  0x4b   :  { %1388 = vmatpush3.msra.mxu1 %v203_v32  ;;  %1397 = vmatpush3.msra.mxu0 %v353_v13  ;;  %v482_v13 = vld [vmem:[#allocation5 + $0x1b0] sm:$0xff] }
  0x4c   :  { %1389 = vmatprep.subr.mxu1 %v202_v33  ;;  %1398 = vmatprep.subr.mxu0 %v352_v14 }
  0x4d   :  { %1390 = vmatpush3.msra.mxu1 %v202_v33  ;;  %1399 = vmatpush3.msra.mxu0 %v352_v14  ;;  %v481_v14 = vld [vmem:[#allocation5 + $0x1a8] sm:$0xff] }
  0x4e   :  { %1400 = vmatprep.subr.mxu0 %v351_v15 }
  0x4f   :  { %1401 = vmatpush3.msra.mxu0 %v351_v15  ;;  %v480_v15 = vld [vmem:[#allocation5 + $0x1a0] sm:$0xff] }
  0x50   :  { %1402 = vmatprep.subr.mxu0 %v350_v16 }
  0x51   :  { %1403 = vmatpush3.msra.mxu0 %v350_v16  ;;  %v479_v16 = vld [vmem:[#allocation5 + $0x198] sm:$0xff] }
  0x52   :  { %1404 = vmatprep.subr.mxu0 %v349_v17 }
  0x53   :  { %1405 = vmatpush3.msra.mxu0 %v349_v17  ;;  %v478_v17 = vld [vmem:[#allocation5 + $0x190] sm:$0xff] }
  0x54   :  { %1406 = vmatprep.subr.mxu0 %v348_v18 }
  0x55   :  { %1407 = vmatpush3.msra.mxu0 %v348_v18  ;;  %v477_v18 = vld [vmem:[#allocation5 + $0x188] sm:$0xff] }
  0x56   :  { %1408 = vmatprep.subr.mxu0 %v347_v19 }
  0x57   :  { %1409 = vmatpush3.msra.mxu0 %v347_v19  ;;  %v476_v19 = vld [vmem:[#allocation5 + $0x180] sm:$0xff] }
  0x58   :  { %1410 = vmatprep.subr.mxu0 %v346_v20 }
  0x59   :  { %1411 = vmatpush3.msra.mxu0 %v346_v20 }
  0x5a   :  { %1412 = vmatprep.subr.mxu0 %v345_v21 }
  0x5b   :  { %1413 = vmatpush3.msra.mxu0 %v345_v21 }
  0x5c   :  { %1414 = vmatprep.subr.mxu0 %v344_v22 }
  0x5d   :  { %1415 = vmatpush3.msra.mxu0 %v344_v22 }
  0x5e   :  { %1416 = vmatprep.subr.mxu0 %v343_v23 }
  0x5f   :  { %1417 = vmatpush3.msra.mxu0 %v343_v23 }
  0x60   :  { %1418 = vmatprep.subr.mxu0 %v342_v24 }
  0x61   :  { %1419 = vmatpush3.msra.mxu0 %v342_v24 }
  0x62   :  { %1420 = vmatprep.subr.mxu0 %v341_v25 }
  0x63   :  { %1421 = vmatpush3.msra.mxu0 %v341_v25 }
  0x64   :  { %1422 = vmatprep.subr.mxu0 %v340_v26 }
  0x65   :  { %1423 = vmatpush3.msra.mxu0 %v340_v26 }
  0x66   :  { %1424 = vmatprep.subr.mxu0 %v339_v27 }
  0x67   :  { %1425 = vmatpush3.msra.mxu0 %v339_v27 }
 0x107   :  { %v1358_v34 = vpop.f32.mrf.mxu0 }
 0x108   :  { %v165_v36 = vmul.f32 %v1358_v34, %v1358_v34 }
 0x109   :  { %v148_v35 = vpop.f32.mrf.mxu0 }
 0x10a   :  { %v157_v37 = vadd.f32 %v1358_v34, %v148_v35  ;;  %v164_v38 = vmul.f32 %v148_v35, %v148_v35 }
 0x10c   :  { %v158_v39 = vrot.slane %v157_v37, 4  ;;  %v166_v40 = vadd.f32 %v165_v36, %v164_v38 }
 0x10e   :  { %v159_v41 = vadd.f32 %v158_v39, %v157_v37  ;;  %v167_v42 = vrot.slane %v166_v40, 4 }
 0x110   :  { %v160_v43 = vrot.slane %v159_v41, 2  ;;  %v168_v44 = vadd.f32 %v167_v42, %v166_v40 }
 0x112   :  { %v161_v45 = vadd.f32 %v160_v43, %v159_v41  ;;  %v169_v46 = vrot.slane %v168_v44, 2 }
 0x114   :  { %v162_v47 = vrot.slane %v161_v45, 1  ;;  %v170_v48 = vadd.f32 %v169_v46, %v168_v44 }
 0x116   :  { %v171_v49 = vrot.slane %v170_v48, 1  ;;  %v163_v50 = vadd.f32 %v162_v47, %v161_v45 }
 0x118   :  { %v172_v51 = vadd.f32 %v171_v49, %v170_v48  ;;  %v173_v52 = vmul.f32 0.0625, %v163_v50 }
 0x11a   :  { %v174_v53 = vmul.f32 0.0625, %v172_v51  ;;  %v175_v54 = vmul.f32 %v173_v52, %v173_v52 }
 0x11c   :  { %v176_v55 = vsub.f32 %v174_v53, %v175_v54 }
 0x11e   :  { %v177_v56 = vmax.f32 %v176_v55, 0.0 }
 0x120   :  { %v179_v57 = vadd.f32 1e-05, %v177_v56 }
 0x122   :  { %1612 = vrsqrt.f32 %v179_v57 }
 0x12f   :  { %v1613_v61 = vpop.eup %1612 }
 0x130   :  { %v181_v62 = vmul.f32 %v1613_v61, %v178_v60 }
 0x132   :  { %v182_v0 = vmul.f32 %v181_v62, %v173_v52  ;;  %v190_v2 = vrot.slane %v181_v62, %v1757_v63  ;;  %v315_v52 = vld [vmem:[#allocation7 + $0x2] sm:$0x3] }
 0x134   :  { %v184_v1 = vrot.slane %v182_v0, 7  ;;  %v191_v5 = vmul.f32 %v190_v2, %v148_v35  ;;  %v192_v7 = vmul.f32 %v1358_v34, %v190_v2 }
 0x136   :  { %v186_v4 = vsub.f32 %v178_v60, %v184_v1 }
 0x138   :  { %v196_v6 = vrot.slane %v186_v4, %v1760_v3  ;;  %v491_v4 = vld [vmem:[#allocation5 + $0x1f8] sm:$0xff] }
 0x139   :  { %1429 = vmatprep.subr.mxu1 %v491_v4 }
 0x13a   :  { %v197_v8 = vadd.f32 %v196_v6, %v191_v5  ;;  %v198_v9 = vadd.f32 %v196_v6, %v192_v7  ;;  %v490_v5 = vld [vmem:[#allocation5 + $0x1f0] sm:$0xff]  ;;  %v489_v6 = vld [vmem:[#allocation5 + $0x1e8] sm:$0xff]  ;;  %v488_v7 = vld [vmem:[#allocation5 + $0x1e0] sm:$0xff] }
 0x13c   :  { %v199_v10 = vmax.f32 %v197_v8, 0.0  ;;  %v200_v11 = vmax.f32 %v198_v9, 0.0  ;;  %v487_v8 = vld [vmem:[#allocation5 + $0x1d8] sm:$0xff]  ;;  %v486_v9 = vld [vmem:[#allocation5 + $0x1d0] sm:$0xff] }
 0x13e   :  { %1391 = vmatprep.mubr.f32.mxu1 %v199_v10  ;;  %v485_v10 = vld [vmem:[#allocation5 + $0x1c8] sm:$0xff] }
 0x13f   :  { %1392 = vmatmul.mubr.f32.vlgmr.msra.gmra.mxu1 %v200_v11  ;;  %v484_v11 = vld [vmem:[#allocation5 + $0x1c0] sm:$0xff] }
 0x140   :  { %1430 = vmatpush3.msra.mxu1 %v491_v4  ;;  %v620_v4 = vld [vmem:[#allocation5 + $0x238] sm:$0xff] }
 0x141   :  { %1431 = vmatprep.subr.mxu1 %v490_v5 }
 0x142   :  { %1432 = vmatpush3.msra.mxu1 %v490_v5  ;;  %v619_v5 = vld [vmem:[#allocation5 + $0x230] sm:$0xff] }
 0x143   :  { %1433 = vmatprep.subr.mxu1 %v489_v6 }
 0x144   :  { %1434 = vmatpush3.msra.mxu1 %v489_v6  ;;  %v618_v6 = vld [vmem:[#allocation5 + $0x228] sm:$0xff] }
 0x145   :  { %1435 = vmatprep.subr.mxu1 %v488_v7 }
 0x146   :  { %1436 = vmatpush3.msra.mxu1 %v488_v7  ;;  %v617_v7 = vld [vmem:[#allocation5 + $0x220] sm:$0xff] }
 0x147   :  { %1437 = vmatprep.subr.mxu1 %v487_v8 }
 0x148   :  { %1438 = vmatpush3.msra.mxu1 %v487_v8  ;;  %v616_v8 = vld [vmem:[#allocation5 + $0x218] sm:$0xff] }
 0x149   :  { %1439 = vmatprep.subr.mxu1 %v486_v9 }
 0x14a   :  { %1440 = vmatpush3.msra.mxu1 %v486_v9  ;;  %v615_v9 = vld [vmem:[#allocation5 + $0x210] sm:$0xff] }
 0x14b   :  { %1441 = vmatprep.subr.mxu1 %v485_v10 }
 0x14c   :  { %1442 = vmatpush3.msra.mxu1 %v485_v10  ;;  %v614_v10 = vld [vmem:[#allocation5 + $0x208] sm:$0xff] }
 0x14d   :  { %1443 = vmatprep.subr.mxu1 %v484_v11 }
 0x14e   :  { %1444 = vmatpush3.msra.mxu1 %v484_v11  ;;  %v613_v11 = vld [vmem:[#allocation5 + $0x200] sm:$0xff] }
 0x14f   :  { %1445 = vmatprep.subr.mxu1 %v483_v12 }
 0x150   :  { %1446 = vmatpush3.msra.mxu1 %v483_v12 }
 0x151   :  { %1447 = vmatprep.subr.mxu1 %v482_v13 }
 0x152   :  { %1448 = vmatpush3.msra.mxu1 %v482_v13 }
 0x153   :  { %1449 = vmatprep.subr.mxu1 %v481_v14 }
 0x154   :  { %1450 = vmatpush3.msra.mxu1 %v481_v14 }
 0x155   :  { %1451 = vmatprep.subr.mxu1 %v480_v15 }
 0x156   :  { %1452 = vmatpush3.msra.mxu1 %v480_v15 }
 0x157   :  { %1453 = vmatprep.subr.mxu1 %v479_v16 }
 0x158   :  { %1454 = vmatpush3.msra.mxu1 %v479_v16 }
 0x159   :  { %1455 = vmatprep.subr.mxu1 %v478_v17 }
 0x15a   :  { %1456 = vmatpush3.msra.mxu1 %v478_v17 }
 0x15b   :  { %1457 = vmatprep.subr.mxu1 %v477_v18 }
 0x15c   :  { %1458 = vmatpush3.msra.mxu1 %v477_v18 }
 0x15d   :  { %1459 = vmatprep.subr.mxu1 %v476_v19 }
 0x15e   :  { %1460 = vmatpush3.msra.mxu1 %v476_v19 }
 0x1ff   :  { %v1393_v28 = vpop.f32.mrf.mxu1 }
 0x200   :  { %v301_v30 = vmul.f32 %v1393_v28, %v1393_v28 }
 0x201   :  { %v284_v29 = vpop.f32.mrf.mxu1 }
 0x202   :  { %v293_v31 = vadd.f32 %v1393_v28, %v284_v29  ;;  %v300_v32 = vmul.f32 %v284_v29, %v284_v29 }
 0x204   :  { %v294_v33 = vrot.slane %v293_v31, 4  ;;  %v302_v34 = vadd.f32 %v301_v30, %v300_v32 }
 0x206   :  { %v295_v35 = vadd.f32 %v294_v33, %v293_v31  ;;  %v303_v36 = vrot.slane %v302_v34, 4 }
 0x208   :  { %v296_v37 = vrot.slane %v295_v35, 2  ;;  %v304_v38 = vadd.f32 %v303_v36, %v302_v34 }
 0x20a   :  { %v297_v39 = vadd.f32 %v296_v37, %v295_v35  ;;  %v305_v40 = vrot.slane %v304_v38, 2 }
 0x20c   :  { %v298_v41 = vrot.slane %v297_v39, 1  ;;  %v306_v42 = vadd.f32 %v305_v40, %v304_v38 }
 0x20e   :  { %v299_v43 = vadd.f32 %v298_v41, %v297_v39  ;;  %v307_v44 = vrot.slane %v306_v42, 1 }
 0x210   :  { %v308_v45 = vadd.f32 %v307_v44, %v306_v42  ;;  %v309_v46 = vmul.f32 0.0625, %v299_v43  ;;  %v452_v44 = vld [vmem:[#allocation7 + $0x4] sm:$0x3] }
 0x212   :  { %v310_v47 = vmul.f32 0.0625, %v308_v45  ;;  %v311_v48 = vmul.f32 %v309_v46, %v309_v46 }
 0x214   :  { %v312_v49 = vsub.f32 %v310_v47, %v311_v48 }
 0x216   :  { %v313_v50 = vmax.f32 %v312_v49, 0.0 }
 0x218   :  { %v316_v51 = vadd.f32 1e-05, %v313_v50 }
 0x21a   :  { %1614 = vrsqrt.f32 %v316_v51 }
 0x227   :  { %v1615_v53 = vpop.eup %1614 }
 0x228   :  { %v318_v54 = vmul.f32 %v1615_v53, %v315_v52 }
 0x22a   :  { %v319_v55 = vmul.f32 %v318_v54, %v309_v46  ;;  %v327_v57 = vrot.slane %v318_v54, %v1757_v63 }
 0x22c   :  { %v321_v56 = vrot.slane %v319_v55, 7  ;;  %v328_v59 = vmul.f32 %v327_v57, %v284_v29  ;;  %v329_v60 = vmul.f32 %v1393_v28, %v327_v57 }
 0x22e   :  { %v323_v58 = vsub.f32 %v315_v52, %v321_v56 }
 0x230   :  { %v333_v61 = vrot.slane %v323_v58, %v1760_v3  ;;  %v628_v58 = vld [vmem:[#allocation5 + $0x278] sm:$0xff] }
 0x231   :  { %1464 = vmatprep.subr.mxu0 %v628_v58 }
 0x232   :  { %v334_v62 = vadd.f32 %v333_v61, %v328_v59  ;;  %v335_v0 = vadd.f32 %v333_v61, %v329_v60  ;;  %v627_v59 = vld [vmem:[#allocation5 + $0x270] sm:$0xff]  ;;  %v626_v60 = vld [vmem:[#allocation5 + $0x268] sm:$0xff]  ;;  %v625_v61 = vld [vmem:[#allocation5 + $0x260] sm:$0xff] }
 0x234   :  { %v336_v1 = vmax.f32 %v334_v62, 0.0  ;;  %v337_v2 = vmax.f32 %v335_v0, 0.0  ;;  %v624_v62 = vld [vmem:[#allocation5 + $0x258] sm:$0xff]  ;;  %v623_v0 = vld [vmem:[#allocation5 + $0x250] sm:$0xff] }
 0x236   :  { %1426 = vmatprep.mubr.f32.mxu0 %v336_v1  ;;  %v622_v1 = vld [vmem:[#allocation5 + $0x248] sm:$0xff] }
 0x237   :  { %1427 = vmatmul.mubr.f32.vlgmr.msra.gmra.mxu0 %v337_v2  ;;  %v621_v2 = vld [vmem:[#allocation5 + $0x240] sm:$0xff] }
 0x238   :  { %1465 = vmatpush3.msra.mxu0 %v628_v58  ;;  %v757_v58 = vld [vmem:[#allocation5 + $0x2b8] sm:$0xff] }
 0x239   :  { %1466 = vmatprep.subr.mxu0 %v627_v59 }
 0x23a   :  { %1467 = vmatpush3.msra.mxu0 %v627_v59  ;;  %v756_v59 = vld [vmem:[#allocation5 + $0x2b0] sm:$0xff] }
 0x23b   :  { %1468 = vmatprep.subr.mxu0 %v626_v60 }
 0x23c   :  { %1469 = vmatpush3.msra.mxu0 %v626_v60  ;;  %v755_v60 = vld [vmem:[#allocation5 + $0x2a8] sm:$0xff] }
 0x23d   :  { %1470 = vmatprep.subr.mxu0 %v625_v61 }
 0x23e   :  { %1471 = vmatpush3.msra.mxu0 %v625_v61  ;;  %v754_v61 = vld [vmem:[#allocation5 + $0x2a0] sm:$0xff] }
 0x23f   :  { %1472 = vmatprep.subr.mxu0 %v624_v62 }
 0x240   :  { %1473 = vmatpush3.msra.mxu0 %v624_v62  ;;  %v753_v62 = vld [vmem:[#allocation5 + $0x298] sm:$0xff] }
 0x241   :  { %1474 = vmatprep.subr.mxu0 %v623_v0 }
 0x242   :  { %1475 = vmatpush3.msra.mxu0 %v623_v0  ;;  %v752_v0 = vld [vmem:[#allocation5 + $0x290] sm:$0xff] }
 0x243   :  { %1476 = vmatprep.subr.mxu0 %v622_v1 }
 0x244   :  { %1477 = vmatpush3.msra.mxu0 %v622_v1  ;;  %v751_v1 = vld [vmem:[#allocation5 + $0x288] sm:$0xff] }
 0x245   :  { %1478 = vmatprep.subr.mxu0 %v621_v2 }
 0x246   :  { %1479 = vmatpush3.msra.mxu0 %v621_v2  ;;  %v750_v2 = vld [vmem:[#allocation5 + $0x280] sm:$0xff] }
 0x247   :  { %1480 = vmatprep.subr.mxu0 %v620_v4 }
 0x248   :  { %1481 = vmatpush3.msra.mxu0 %v620_v4 }
 0x249   :  { %1482 = vmatprep.subr.mxu0 %v619_v5 }
 0x24a   :  { %1483 = vmatpush3.msra.mxu0 %v619_v5 }
 0x24b   :  { %1484 = vmatprep.subr.mxu0 %v618_v6 }
 0x24c   :  { %1485 = vmatpush3.msra.mxu0 %v618_v6 }
 0x24d   :  { %1486 = vmatprep.subr.mxu0 %v617_v7 }
 0x24e   :  { %1487 = vmatpush3.msra.mxu0 %v617_v7 }
 0x24f   :  { %1488 = vmatprep.subr.mxu0 %v616_v8 }
 0x250   :  { %1489 = vmatpush3.msra.mxu0 %v616_v8 }
 0x251   :  { %1490 = vmatprep.subr.mxu0 %v615_v9 }
 0x252   :  { %1491 = vmatpush3.msra.mxu0 %v615_v9 }
 0x253   :  { %1492 = vmatprep.subr.mxu0 %v614_v10 }
 0x254   :  { %1493 = vmatpush3.msra.mxu0 %v614_v10 }
 0x255   :  { %1494 = vmatprep.subr.mxu0 %v613_v11 }
 0x256   :  { %1495 = vmatpush3.msra.mxu0 %v613_v11 }
 0x2f7   :  { %v1428_v20 = vpop.f32.mrf.mxu0 }
 0x2f8   :  { %v438_v22 = vmul.f32 %v1428_v20, %v1428_v20 }
 0x2f9   :  { %v421_v21 = vpop.f32.mrf.mxu0 }
 0x2fa   :  { %v430_v23 = vadd.f32 %v1428_v20, %v421_v21  ;;  %v437_v24 = vmul.f32 %v421_v21, %v421_v21 }
 0x2fc   :  { %v431_v25 = vrot.slane %v430_v23, 4  ;;  %v439_v26 = vadd.f32 %v438_v22, %v437_v24 }
 0x2fe   :  { %v432_v27 = vadd.f32 %v431_v25, %v430_v23  ;;  %v440_v28 = vrot.slane %v439_v26, 4 }
 0x300   :  { %v433_v29 = vrot.slane %v432_v27, 2  ;;  %v441_v30 = vadd.f32 %v440_v28, %v439_v26 }
 0x302   :  { %v434_v31 = vadd.f32 %v433_v29, %v432_v27  ;;  %v442_v32 = vrot.slane %v441_v30, 2 }
 0x304   :  { %v435_v33 = vrot.slane %v434_v31, 1  ;;  %v443_v34 = vadd.f32 %v442_v32, %v441_v30 }
 0x306   :  { %v436_v35 = vadd.f32 %v435_v33, %v434_v31  ;;  %v444_v36 = vrot.slane %v443_v34, 1 }
 0x308   :  { %v445_v37 = vadd.f32 %v444_v36, %v443_v34  ;;  %v446_v38 = vmul.f32 0.0625, %v436_v35  ;;  %v589_v36 = vld [vmem:[#allocation7 + $0x6] sm:$0x3] }
 0x30a   :  { %v447_v39 = vmul.f32 0.0625, %v445_v37  ;;  %v448_v40 = vmul.f32 %v446_v38, %v446_v38 }
 0x30c   :  { %v449_v41 = vsub.f32 %v447_v39, %v448_v40 }
 0x30e   :  { %v450_v42 = vmax.f32 %v449_v41, 0.0 }
 0x310   :  { %v453_v43 = vadd.f32 1e-05, %v450_v42 }
 0x312   :  { %1616 = vrsqrt.f32 %v453_v43 }
 0x31f   :  { %v1617_v45 = vpop.eup %1616 }
 0x320   :  { %v455_v46 = vmul.f32 %v1617_v45, %v452_v44 }
 0x322   :  { %v456_v47 = vmul.f32 %v455_v46, %v446_v38  ;;  %v464_v49 = vrot.slane %v455_v46, %v1757_v63 }
 0x324   :  { %v458_v48 = vrot.slane %v456_v47, 7  ;;  %v465_v51 = vmul.f32 %v464_v49, %v421_v21  ;;  %v466_v52 = vmul.f32 %v1428_v20, %v464_v49 }
 0x326   :  { %v460_v50 = vsub.f32 %v452_v44, %v458_v48 }
 0x328   :  { %v470_v53 = vrot.slane %v460_v50, %v1760_v3  ;;  %v765_v50 = vld [vmem:[#allocation5 + $0x2f8] sm:$0xff] }
 0x329   :  { %1499 = vmatprep.subr.mxu1 %v765_v50 }
 0x32a   :  { %v471_v54 = vadd.f32 %v470_v53, %v465_v51  ;;  %v472_v55 = vadd.f32 %v470_v53, %v466_v52  ;;  %v764_v51 = vld [vmem:[#allocation5 + $0x2f0] sm:$0xff]  ;;  %v763_v52 = vld [vmem:[#allocation5 + $0x2e8] sm:$0xff]  ;;  %v762_v53 = vld [vmem:[#allocation5 + $0x2e0] sm:$0xff] }
 0x32c   :  { %v473_v56 = vmax.f32 %v471_v54, 0.0  ;;  %v474_v57 = vmax.f32 %v472_v55, 0.0  ;;  %v761_v54 = vld [vmem:[#allocation5 + $0x2d8] sm:$0xff]  ;;  %v760_v55 = vld [vmem:[#allocation5 + $0x2d0] sm:$0xff] }
 0x32e   :  { %1461 = vmatprep.mubr.f32.mxu1 %v473_v56  ;;  %v759_v56 = vld [vmem:[#allocation5 + $0x2c8] sm:$0xff] }
 0x32f   :  { %1462 = vmatmul.mubr.f32.vlgmr.msra.gmra.mxu1 %v474_v57  ;;  %v758_v57 = vld [vmem:[#allocation5 + $0x2c0] sm:$0xff] }
 0x330   :  { %1500 = vmatpush3.msra.mxu1 %v765_v50  ;;  %v894_v50 = vld [vmem:[#allocation5 + $0x338] sm:$0xff] }
 0x331   :  { %1501 = vmatprep.subr.mxu1 %v764_v51 }
 0x332   :  { %1502 = vmatpush3.msra.mxu1 %v764_v51  ;;  %v893_v51 = vld [vmem:[#allocation5 + $0x330] sm:$0xff] }
 0x333   :  { %1503 = vmatprep.subr.mxu1 %v763_v52 }
 0x334   :  { %1504 = vmatpush3.msra.mxu1 %v763_v52  ;;  %v892_v52 = vld [vmem:[#allocation5 + $0x328] sm:$0xff] }
 0x335   :  { %1505 = vmatprep.subr.mxu1 %v762_v53 }
 0x336   :  { %1506 = vmatpush3.msra.mxu1 %v762_v53  ;;  %v891_v53 = vld [vmem:[#allocation5 + $0x320] sm:$0xff] }
 0x337   :  { %1507 = vmatprep.subr.mxu1 %v761_v54 }
 0x338   :  { %1508 = vmatpush3.msra.mxu1 %v761_v54  ;;  %v890_v54 = vld [vmem:[#allocation5 + $0x318] sm:$0xff] }
 0x339   :  { %1509 = vmatprep.subr.mxu1 %v760_v55 }
 0x33a   :  { %1510 = vmatpush3.msra.mxu1 %v760_v55  ;;  %v889_v55 = vld [vmem:[#allocation5 + $0x310] sm:$0xff] }
 0x33b   :  { %1511 = vmatprep.subr.mxu1 %v759_v56 }
 0x33c   :  { %1512 = vmatpush3.msra.mxu1 %v759_v56  ;;  %v888_v56 = vld [vmem:[#allocation5 + $0x308] sm:$0xff] }
 0x33d   :  { %1513 = vmatprep.subr.mxu1 %v758_v57 }
 0x33e   :  { %1514 = vmatpush3.msra.mxu1 %v758_v57  ;;  %v887_v57 = vld [vmem:[#allocation5 + $0x300] sm:$0xff] }
 0x33f   :  { %1515 = vmatprep.subr.mxu1 %v757_v58 }
 0x340   :  { %1516 = vmatpush3.msra.mxu1 %v757_v58 }
 0x341   :  { %1517 = vmatprep.subr.mxu1 %v756_v59 }
 0x342   :  { %1518 = vmatpush3.msra.mxu1 %v756_v59 }
 0x343   :  { %1519 = vmatprep.subr.mxu1 %v755_v60 }
 0x344   :  { %1520 = vmatpush3.msra.mxu1 %v755_v60 }
 0x345   :  { %1521 = vmatprep.subr.mxu1 %v754_v61 }
 0x346   :  { %1522 = vmatpush3.msra.mxu1 %v754_v61 }
 0x347   :  { %1523 = vmatprep.subr.mxu1 %v753_v62 }
 0x348   :  { %1524 = vmatpush3.msra.mxu1 %v753_v62 }
 0x349   :  { %1525 = vmatprep.subr.mxu1 %v752_v0 }
 0x34a   :  { %1526 = vmatpush3.msra.mxu1 %v752_v0 }
 0x34b   :  { %1527 = vmatprep.subr.mxu1 %v751_v1 }
 0x34c   :  { %1528 = vmatpush3.msra.mxu1 %v751_v1 }
 0x34d   :  { %1529 = vmatprep.subr.mxu1 %v750_v2 }
 0x34e   :  { %1530 = vmatpush3.msra.mxu1 %v750_v2 }
 0x3ef   :  { %v1463_v12 = vpop.f32.mrf.mxu1 }
 0x3f0   :  { %v575_v14 = vmul.f32 %v1463_v12, %v1463_v12 }
 0x3f1   :  { %v558_v13 = vpop.f32.mrf.mxu1 }
 0x3f2   :  { %v567_v15 = vadd.f32 %v1463_v12, %v558_v13  ;;  %v574_v16 = vmul.f32 %v558_v13, %v558_v13 }
 0x3f4   :  { %v568_v17 = vrot.slane %v567_v15, 4  ;;  %v576_v18 = vadd.f32 %v575_v14, %v574_v16 }
 0x3f6   :  { %v569_v19 = vadd.f32 %v568_v17, %v567_v15  ;;  %v577_v20 = vrot.slane %v576_v18, 4 }
 0x3f8   :  { %v570_v21 = vrot.slane %v569_v19, 2  ;;  %v578_v22 = vadd.f32 %v577_v20, %v576_v18 }
 0x3fa   :  { %v571_v23 = vadd.f32 %v570_v21, %v569_v19  ;;  %v579_v24 = vrot.slane %v578_v22, 2 }
 0x3fc   :  { %v572_v25 = vrot.slane %v571_v23, 1  ;;  %v580_v26 = vadd.f32 %v579_v24, %v578_v22 }
 0x3fe   :  { %v573_v27 = vadd.f32 %v572_v25, %v571_v23  ;;  %v581_v28 = vrot.slane %v580_v26, 1 }
 0x400   :  { %v582_v29 = vadd.f32 %v581_v28, %v580_v26  ;;  %v583_v30 = vmul.f32 0.0625, %v573_v27  ;;  %v726_v28 = vld [vmem:[#allocation7 + $0x8] sm:$0x3] }
 0x402   :  { %v584_v31 = vmul.f32 0.0625, %v582_v29  ;;  %v585_v32 = vmul.f32 %v583_v30, %v583_v30 }
 0x404   :  { %v586_v33 = vsub.f32 %v584_v31, %v585_v32 }
 0x406   :  { %v587_v34 = vmax.f32 %v586_v33, 0.0 }
 0x408   :  { %v590_v35 = vadd.f32 1e-05, %v587_v34 }
 0x40a   :  { %1618 = vrsqrt.f32 %v590_v35 }
 0x417   :  { %v1619_v37 = vpop.eup %1618 }
 0x418   :  { %v592_v38 = vmul.f32 %v1619_v37, %v589_v36 }
 0x41a   :  { %v593_v39 = vmul.f32 %v592_v38, %v583_v30  ;;  %v601_v41 = vrot.slane %v592_v38, %v1757_v63 }
 0x41c   :  { %v595_v40 = vrot.slane %v593_v39, 7  ;;  %v602_v43 = vmul.f32 %v601_v41, %v558_v13  ;;  %v603_v44 = vmul.f32 %v1463_v12, %v601_v41 }
 0x41e   :  { %v597_v42 = vsub.f32 %v589_v36, %v595_v40 }
 0x420   :  { %v607_v45 = vrot.slane %v597_v42, %v1760_v3  ;;  %v902_v42 = vld [vmem:[#allocation5 + $0x378] sm:$0xff] }
 0x421   :  { %1534 = vmatprep.subr.mxu0 %v902_v42 }
 0x422   :  { %v608_v46 = vadd.f32 %v607_v45, %v602_v43  ;;  %v609_v47 = vadd.f32 %v607_v45, %v603_v44  ;;  %v901_v43 = vld [vmem:[#allocation5 + $0x370] sm:$0xff]  ;;  %v900_v44 = vld [vmem:[#allocation5 + $0x368] sm:$0xff]  ;;  %v899_v45 = vld [vmem:[#allocation5 + $0x360] sm:$0xff] }
 0x424   :  { %v610_v48 = vmax.f32 %v608_v46, 0.0  ;;  %v611_v49 = vmax.f32 %v609_v47, 0.0  ;;  %v898_v46 = vld [vmem:[#allocation5 + $0x358] sm:$0xff]  ;;  %v897_v47 = vld [vmem:[#allocation5 + $0x350] sm:$0xff] }
 0x426   :  { %1496 = vmatprep.mubr.f32.mxu0 %v610_v48  ;;  %v896_v48 = vld [vmem:[#allocation5 + $0x348] sm:$0xff] }
 0x427   :  { %1497 = vmatmul.mubr.f32.vlgmr.msra.gmra.mxu0 %v611_v49  ;;  %v895_v49 = vld [vmem:[#allocation5 + $0x340] sm:$0xff] }
 0x428   :  { %1535 = vmatpush3.msra.mxu0 %v902_v42  ;;  %v1031_v42 = vld [vmem:[#allocation5 + $0x3b8] sm:$0xff] }
 0x429   :  { %1536 = vmatprep.subr.mxu0 %v901_v43 }
 0x42a   :  { %1537 = vmatpush3.msra.mxu0 %v901_v43  ;;  %v1030_v43 = vld [vmem:[#allocation5 + $0x3b0] sm:$0xff] }
 0x42b   :  { %1538 = vmatprep.subr.mxu0 %v900_v44 }
 0x42c   :  { %1539 = vmatpush3.msra.mxu0 %v900_v44  ;;  %v1029_v44 = vld [vmem:[#allocation5 + $0x3a8] sm:$0xff] }
 0x42d   :  { %1540 = vmatprep.subr.mxu0 %v899_v45 }
 0x42e   :  { %1541 = vmatpush3.msra.mxu0 %v899_v45  ;;  %v1028_v45 = vld [vmem:[#allocation5 + $0x3a0] sm:$0xff] }
 0x42f   :  { %1542 = vmatprep.subr.mxu0 %v898_v46 }
 0x430   :  { %1543 = vmatpush3.msra.mxu0 %v898_v46  ;;  %v1027_v46 = vld [vmem:[#allocation5 + $0x398] sm:$0xff] }
 0x431   :  { %1544 = vmatprep.subr.mxu0 %v897_v47 }
 0x432   :  { %1545 = vmatpush3.msra.mxu0 %v897_v47  ;;  %v1026_v47 = vld [vmem:[#allocation5 + $0x390] sm:$0xff] }
 0x433   :  { %1546 = vmatprep.subr.mxu0 %v896_v48 }
 0x434   :  { %1547 = vmatpush3.msra.mxu0 %v896_v48  ;;  %v1025_v48 = vld [vmem:[#allocation5 + $0x388] sm:$0xff] }
 0x435   :  { %1548 = vmatprep.subr.mxu0 %v895_v49 }
 0x436   :  { %1549 = vmatpush3.msra.mxu0 %v895_v49  ;;  %v1024_v49 = vld [vmem:[#allocation5 + $0x380] sm:$0xff] }
 0x437   :  { %1550 = vmatprep.subr.mxu0 %v894_v50 }
 0x438   :  { %1551 = vmatpush3.msra.mxu0 %v894_v50 }
 0x439   :  { %1552 = vmatprep.subr.mxu0 %v893_v51 }
 0x43a   :  { %1553 = vmatpush3.msra.mxu0 %v893_v51 }
 0x43b   :  { %1554 = vmatprep.subr.mxu0 %v892_v52 }
 0x43c   :  { %1555 = vmatpush3.msra.mxu0 %v892_v52 }
 0x43d   :  { %1556 = vmatprep.subr.mxu0 %v891_v53 }
 0x43e   :  { %1557 = vmatpush3.msra.mxu0 %v891_v53 }
 0x43f   :  { %1558 = vmatprep.subr.mxu0 %v890_v54 }
 0x440   :  { %1559 = vmatpush3.msra.mxu0 %v890_v54 }
 0x441   :  { %1560 = vmatprep.subr.mxu0 %v889_v55 }
 0x442   :  { %1561 = vmatpush3.msra.mxu0 %v889_v55 }
 0x443   :  { %1562 = vmatprep.subr.mxu0 %v888_v56 }
 0x444   :  { %1563 = vmatpush3.msra.mxu0 %v888_v56 }
 0x445   :  { %1564 = vmatprep.subr.mxu0 %v887_v57 }
 0x446   :  { %1565 = vmatpush3.msra.mxu0 %v887_v57 }
 0x4e7   :  { %v1498_v4 = vpop.f32.mrf.mxu0 }
 0x4e8   :  { %v712_v6 = vmul.f32 %v1498_v4, %v1498_v4 }
 0x4e9   :  { %v695_v5 = vpop.f32.mrf.mxu0 }
 0x4ea   :  { %v704_v7 = vadd.f32 %v1498_v4, %v695_v5  ;;  %v711_v8 = vmul.f32 %v695_v5, %v695_v5 }
 0x4ec   :  { %v705_v9 = vrot.slane %v704_v7, 4  ;;  %v713_v10 = vadd.f32 %v712_v6, %v711_v8 }
 0x4ee   :  { %v706_v11 = vadd.f32 %v705_v9, %v704_v7  ;;  %v714_v12 = vrot.slane %v713_v10, 4 }
 0x4f0   :  { %v707_v13 = vrot.slane %v706_v11, 2  ;;  %v715_v14 = vadd.f32 %v714_v12, %v713_v10 }
 0x4f2   :  { %v708_v15 = vadd.f32 %v707_v13, %v706_v11  ;;  %v716_v16 = vrot.slane %v715_v14, 2 }
 0x4f4   :  { %v709_v17 = vrot.slane %v708_v15, 1  ;;  %v717_v18 = vadd.f32 %v716_v16, %v715_v14 }
 0x4f6   :  { %v710_v19 = vadd.f32 %v709_v17, %v708_v15  ;;  %v718_v20 = vrot.slane %v717_v18, 1 }
 0x4f8   :  { %v719_v21 = vadd.f32 %v718_v20, %v717_v18  ;;  %v720_v22 = vmul.f32 0.0625, %v710_v19  ;;  %v863_v20 = vld [vmem:[#allocation7 + $0xa] sm:$0x3] }
 0x4fa   :  { %v721_v23 = vmul.f32 0.0625, %v719_v21  ;;  %v722_v24 = vmul.f32 %v720_v22, %v720_v22 }
 0x4fc   :  { %v723_v25 = vsub.f32 %v721_v23, %v722_v24 }
 0x4fe   :  { %v724_v26 = vmax.f32 %v723_v25, 0.0 }
 0x500   :  { %v727_v27 = vadd.f32 1e-05, %v724_v26 }
 0x502   :  { %1620 = vrsqrt.f32 %v727_v27 }
 0x50f   :  { %v1621_v29 = vpop.eup %1620 }
 0x510   :  { %v729_v30 = vmul.f32 %v1621_v29, %v726_v28 }
 0x512   :  { %v730_v31 = vmul.f32 %v729_v30, %v720_v22  ;;  %v738_v33 = vrot.slane %v729_v30, %v1757_v63 }
 0x514   :  { %v732_v32 = vrot.slane %v730_v31, 7  ;;  %v739_v35 = vmul.f32 %v738_v33, %v695_v5  ;;  %v740_v36 = vmul.f32 %v1498_v4, %v738_v33 }
 0x516   :  { %v734_v34 = vsub.f32 %v726_v28, %v732_v32 }
 0x518   :  { %v744_v37 = vrot.slane %v734_v34, %v1760_v3  ;;  %v1039_v34 = vld [vmem:[#allocation5 + $0x3f8] sm:$0xff] }
 0x519   :  { %1569 = vmatprep.subr.mxu1 %v1039_v34 }
 0x51a   :  { %v745_v38 = vadd.f32 %v744_v37, %v739_v35  ;;  %v746_v39 = vadd.f32 %v744_v37, %v740_v36  ;;  %v1038_v35 = vld [vmem:[#allocation5 + $0x3f0] sm:$0xff]  ;;  %v1037_v36 = vld [vmem:[#allocation5 + $0x3e8] sm:$0xff]  ;;  %v1036_v37 = vld [vmem:[#allocation5 + $0x3e0] sm:$0xff] }
 0x51c   :  { %v747_v40 = vmax.f32 %v745_v38, 0.0  ;;  %v748_v41 = vmax.f32 %v746_v39, 0.0  ;;  %v1035_v38 = vld [vmem:[#allocation5 + $0x3d8] sm:$0xff]  ;;  %v1034_v39 = vld [vmem:[#allocation5 + $0x3d0] sm:$0xff] }
 0x51e   :  { %1531 = vmatprep.mubr.f32.mxu1 %v747_v40  ;;  %v1033_v40 = vld [vmem:[#allocation5 + $0x3c8] sm:$0xff] }
 0x51f   :  { %1532 = vmatmul.mubr.f32.vlgmr.msra.gmra.mxu1 %v748_v41  ;;  %v1032_v41 = vld [vmem:[#allocation5 + $0x3c0] sm:$0xff] }
 0x520   :  { %1570 = vmatpush3.msra.mxu1 %v1039_v34 }
 0x521   :  { %1571 = vmatprep.subr.mxu1 %v1038_v35 }
 0x522   :  { %1572 = vmatpush3.msra.mxu1 %v1038_v35 }
 0x523   :  { %1573 = vmatprep.subr.mxu1 %v1037_v36 }
 0x524   :  { %1574 = vmatpush3.msra.mxu1 %v1037_v36 }
 0x525   :  { %1575 = vmatprep.subr.mxu1 %v1036_v37 }
 0x526   :  { %1576 = vmatpush3.msra.mxu1 %v1036_v37 }
 0x527   :  { %1577 = vmatprep.subr.mxu1 %v1035_v38 }
 0x528   :  { %1578 = vmatpush3.msra.mxu1 %v1035_v38 }
 0x529   :  { %1579 = vmatprep.subr.mxu1 %v1034_v39 }
 0x52a   :  { %1580 = vmatpush3.msra.mxu1 %v1034_v39 }
 0x52b   :  { %1581 = vmatprep.subr.mxu1 %v1033_v40 }
 0x52c   :  { %1582 = vmatpush3.msra.mxu1 %v1033_v40 }
 0x52d   :  { %1583 = vmatprep.subr.mxu1 %v1032_v41 }
 0x52e   :  { %1584 = vmatpush3.msra.mxu1 %v1032_v41 }
 0x52f   :  { %1585 = vmatprep.subr.mxu1 %v1031_v42 }
 0x530   :  { %1586 = vmatpush3.msra.mxu1 %v1031_v42 }
 0x531   :  { %1587 = vmatprep.subr.mxu1 %v1030_v43 }
 0x532   :  { %1588 = vmatpush3.msra.mxu1 %v1030_v43 }
 0x533   :  { %1589 = vmatprep.subr.mxu1 %v1029_v44 }
 0x534   :  { %1590 = vmatpush3.msra.mxu1 %v1029_v44 }
 0x535   :  { %1591 = vmatprep.subr.mxu1 %v1028_v45 }
 0x536   :  { %1592 = vmatpush3.msra.mxu1 %v1028_v45 }
 0x537   :  { %1593 = vmatprep.subr.mxu1 %v1027_v46 }
 0x538   :  { %1594 = vmatpush3.msra.mxu1 %v1027_v46 }
 0x539   :  { %1595 = vmatprep.subr.mxu1 %v1026_v47 }
 0x53a   :  { %1596 = vmatpush3.msra.mxu1 %v1026_v47 }
 0x53b   :  { %1597 = vmatprep.subr.mxu1 %v1025_v48 }
 0x53c   :  { %1598 = vmatpush3.msra.mxu1 %v1025_v48 }
 0x53d   :  { %1599 = vmatprep.subr.mxu1 %v1024_v49 }
 0x53e   :  { %1600 = vmatpush3.msra.mxu1 %v1024_v49 }
 0x5df   :  { %v1533_v58 = vpop.f32.mrf.mxu1 }
 0x5e0   :  { %v849_v60 = vmul.f32 %v1533_v58, %v1533_v58 }
 0x5e1   :  { %v832_v59 = vpop.f32.mrf.mxu1 }
 0x5e2   :  { %v841_v61 = vadd.f32 %v1533_v58, %v832_v59  ;;  %v848_v62 = vmul.f32 %v832_v59, %v832_v59 }
 0x5e4   :  { %v842_v0 = vrot.slane %v841_v61, 4  ;;  %v850_v1 = vadd.f32 %v849_v60, %v848_v62 }
 0x5e6   :  { %v843_v2 = vadd.f32 %v842_v0, %v841_v61  ;;  %v851_v4 = vrot.slane %v850_v1, 4 }
 0x5e8   :  { %v844_v5 = vrot.slane %v843_v2, 2  ;;  %v852_v6 = vadd.f32 %v851_v4, %v850_v1 }
 0x5ea   :  { %v845_v7 = vadd.f32 %v844_v5, %v843_v2  ;;  %v853_v8 = vrot.slane %v852_v6, 2 }
 0x5ec   :  { %v846_v9 = vrot.slane %v845_v7, 1  ;;  %v854_v10 = vadd.f32 %v853_v8, %v852_v6 }
 0x5ee   :  { %v847_v11 = vadd.f32 %v846_v9, %v845_v7  ;;  %v855_v12 = vrot.slane %v854_v10, 1 }
 0x5f0   :  { %v856_v13 = vadd.f32 %v855_v12, %v854_v10  ;;  %v857_v14 = vmul.f32 0.0625, %v847_v11  ;;  %v1000_v12 = vld [vmem:[#allocation7 + $0xc] sm:$0x3] }
 0x5f2   :  { %v858_v15 = vmul.f32 0.0625, %v856_v13  ;;  %v859_v16 = vmul.f32 %v857_v14, %v857_v14 }
 0x5f4   :  { %v860_v17 = vsub.f32 %v858_v15, %v859_v16 }
 0x5f6   :  { %v861_v18 = vmax.f32 %v860_v17, 0.0 }
 0x5f8   :  { %v864_v19 = vadd.f32 1e-05, %v861_v18 }
 0x5fa   :  { %1622 = vrsqrt.f32 %v864_v19 }
 0x607   :  { %v1623_v21 = vpop.eup %1622 }
 0x608   :  { %v866_v22 = vmul.f32 %v1623_v21, %v863_v20 }
 0x60a   :  { %v867_v23 = vmul.f32 %v866_v22, %v857_v14  ;;  %v875_v25 = vrot.slane %v866_v22, %v1757_v63 }
 0x60c   :  { %v869_v24 = vrot.slane %v867_v23, 7  ;;  %v876_v27 = vmul.f32 %v875_v25, %v832_v59  ;;  %v877_v28 = vmul.f32 %v1533_v58, %v875_v25 }
 0x60e   :  { %v871_v26 = vsub.f32 %v863_v20, %v869_v24 }
 0x610   :  { %v881_v29 = vrot.slane %v871_v26, %v1760_v3 }
 0x612   :  { %v882_v30 = vadd.f32 %v881_v29, %v876_v27  ;;  %v883_v31 = vadd.f32 %v881_v29, %v877_v28 }
 0x614   :  { %v884_v32 = vmax.f32 %v882_v30, 0.0  ;;  %v885_v33 = vmax.f32 %v883_v31, 0.0 }
 0x616   :  { %1566 = vmatprep.mubr.f32.mxu0 %v884_v32 }
 0x617   :  { %1567 = vmatmul.mubr.f32.vlgmr.msra.gmra.mxu0 %v885_v33 }
 0x6d7   :  { %v1568_v50 = vpop.f32.mrf.mxu0 }
 0x6d8   :  { %v986_v52 = vmul.f32 %v1568_v50, %v1568_v50 }
 0x6d9   :  { %v969_v51 = vpop.f32.mrf.mxu0 }
 0x6da   :  { %v978_v53 = vadd.f32 %v1568_v50, %v969_v51  ;;  %v985_v54 = vmul.f32 %v969_v51, %v969_v51 }
 0x6dc   :  { %v979_v55 = vrot.slane %v978_v53, 4  ;;  %v987_v56 = vadd.f32 %v986_v52, %v985_v54 }
 0x6de   :  { %v980_v57 = vadd.f32 %v979_v55, %v978_v53  ;;  %v988_v58 = vrot.slane %v987_v56, 4 }
 0x6e0   :  { %v981_v59 = vrot.slane %v980_v57, 2  ;;  %v989_v60 = vadd.f32 %v988_v58, %v987_v56 }
 0x6e2   :  { %v982_v61 = vadd.f32 %v981_v59, %v980_v57  ;;  %v990_v62 = vrot.slane %v989_v60, 2 }
 0x6e4   :  { %v983_v0 = vrot.slane %v982_v61, 1  ;;  %v991_v1 = vadd.f32 %v990_v62, %v989_v60 }
 0x6e6   :  { %v984_v2 = vadd.f32 %v983_v0, %v982_v61  ;;  %v992_v4 = vrot.slane %v991_v1, 1 }
 0x6e8   :  { %v993_v5 = vadd.f32 %v992_v4, %v991_v1  ;;  %v994_v6 = vmul.f32 0.0625, %v984_v2 }
 0x6ea   :  { %v995_v7 = vmul.f32 0.0625, %v993_v5  ;;  %v996_v8 = vmul.f32 %v994_v6, %v994_v6 }
 0x6ec   :  { %v997_v9 = vsub.f32 %v995_v7, %v996_v8 }
 0x6ee   :  { %v998_v10 = vmax.f32 %v997_v9, 0.0 }
 0x6f0   :  { %v1001_v11 = vadd.f32 1e-05, %v998_v10 }
 0x6f2   :  { %1624 = vrsqrt.f32 %v1001_v11 }
 0x6ff   :  { %v1625_v13 = vpop.eup %1624 }
 0x700   :  { %v1003_v14 = vmul.f32 %v1625_v13, %v1000_v12 }
 0x702   :  { %v1004_v15 = vmul.f32 %v1003_v14, %v994_v6  ;;  %v1012_v17 = vrot.slane %v1003_v14, %v1757_v63 }
 0x704   :  { %v1006_v16 = vrot.slane %v1004_v15, 7  ;;  %v1013_v19 = vmul.f32 %v1012_v17, %v969_v51  ;;  %v1014_v20 = vmul.f32 %v1568_v50, %v1012_v17  ;;  %v1137_v50 = vld [vmem:[#allocation7 + $0xe] sm:$0x3] }
 0x706   :  { %v1008_v18 = vsub.f32 %v1000_v12, %v1006_v16 }
 0x708   :  { %v1018_v21 = vrot.slane %v1008_v18, %v1760_v3 }
 0x70a   :  { %v1019_v22 = vadd.f32 %v1018_v21, %v1013_v19  ;;  %v1020_v23 = vadd.f32 %v1018_v21, %v1014_v20 }
 0x70c   :  { %v1021_v24 = vmax.f32 %v1019_v22, 0.0  ;;  %v1022_v25 = vmax.f32 %v1020_v23, 0.0 }
 0x70e   :  { %1601 = vmatprep.mubr.f32.mxu1 %v1021_v24 }
 0x70f   :  { %1602 = vmatmul.mubr.f32.vlgmr.msra.gmra.mxu1 %v1022_v25 }
 0x7cf   :  { %v1603_v26 = vpop.f32.mrf.mxu1 }
 0x7d0   :  { %v1123_v28 = vmul.f32 %v1603_v26, %v1603_v26 }
 0x7d1   :  { %v1106_v27 = vpop.f32.mrf.mxu1 }
 0x7d2   :  { %v1115_v29 = vadd.f32 %v1603_v26, %v1106_v27  ;;  %v1122_v30 = vmul.f32 %v1106_v27, %v1106_v27 }
 0x7d4   :  { %v1116_v31 = vrot.slane %v1115_v29, 4  ;;  %v1124_v32 = vadd.f32 %v1123_v28, %v1122_v30 }
 0x7d6   :  { %v1117_v33 = vadd.f32 %v1116_v31, %v1115_v29  ;;  %v1125_v34 = vrot.slane %v1124_v32, 4 }
 0x7d8   :  { %v1118_v35 = vrot.slane %v1117_v33, 2  ;;  %v1126_v36 = vadd.f32 %v1125_v34, %v1124_v32 }
 0x7da   :  { %v1119_v37 = vadd.f32 %v1118_v35, %v1117_v33  ;;  %v1127_v38 = vrot.slane %v1126_v36, 2 }
 0x7dc   :  { %v1120_v39 = vrot.slane %v1119_v37, 1  ;;  %v1128_v40 = vadd.f32 %v1127_v38, %v1126_v36 }
 0x7de   :  { %v1121_v41 = vadd.f32 %v1120_v39, %v1119_v37  ;;  %v1129_v42 = vrot.slane %v1128_v40, 1 }
 0x7e0   :  { %v1130_v43 = vadd.f32 %v1129_v42, %v1128_v40  ;;  %v1131_v44 = vmul.f32 0.0625, %v1121_v41 }
 0x7e2   :  { %v1132_v45 = vmul.f32 0.0625, %v1130_v43  ;;  %v1133_v46 = vmul.f32 %v1131_v44, %v1131_v44 }
 0x7e4   :  { %v1134_v47 = vsub.f32 %v1132_v45, %v1133_v46 }
 0x7e6   :  { %v1135_v48 = vmax.f32 %v1134_v47, 0.0 }
 0x7e8   :  { %v1138_v49 = vadd.f32 1e-05, %v1135_v48 }
 0x7ea   :  { %1626 = vrsqrt.f32 %v1138_v49 }
 0x7f7   :  { %v1627_v51 = vpop.eup %1626 }
 0x7f8   :  { %v1140_v52 = vmul.f32 %v1627_v51, %v1137_v50 }
 0x7fa   :  { %v1141_v53 = vmul.f32 %v1140_v52, %v1131_v44  ;;  %v1149_v55 = vrot.slane %v1140_v52, %v1757_v63 }
 0x7fc   :  { %v1143_v54 = vrot.slane %v1141_v53, 7  ;;  %v1150_v57 = vmul.f32 %v1149_v55, %v1106_v27  ;;  %v1151_v58 = vmul.f32 %v1603_v26, %v1149_v55 }
 0x7fe   :  { %v1145_v56 = vsub.f32 %v1137_v50, %v1143_v54 }
 0x800   :  { %v1155_v59 = vrot.slane %v1145_v56, %v1760_v3 }
 0x802   :  { %v1156_v60 = vadd.f32 %v1155_v59, %v1150_v57  ;;  %v1157_v61 = vadd.f32 %v1155_v59, %v1151_v58 }
 0x804   :  { %v1158_v62 = vmax.f32 %v1156_v60, 0.0  ;;  %v1159_v0 = vmax.f32 %v1157_v61, 0.0 }
 0x806   :  { %1160 = vst [vmem:[#allocation8] sm:$0xff] %v1158_v62  ;;  %1161 = vst [vmem:[#allocation8 + $0x8] sm:$0xff] %v1159_v0 }
 0x807   :  { %1699 = shalt.err (!%p1696_p5)
}
 0x808   :  { %1173 = dma.vmem_to_hbm [thread:$0]  %s1168_s2, 256, %s1786_s3, [#allocation4], %s1716_s17, %s1716_s17, %s1717_s18  }
 0x809   :  { %1712 = dma.done.wait [#allocation4], 256  }
 0x80a   :  { %1713 = vsyncadd [#allocation4], 4294967040 }
 0x80b   :  { %1177 = vsyncpa [#allocation3], 1 }
 0x80c   :  { %1178 = vsyncpa [#allocation6], 1 }
 0x80d   :  { %1179 = vsyncpa [#allocation4], 1 }

</bundles_post_ra>
